<compile_context>
chip_gen: v6e
topology: v6e:2x2x1
jax: 0.10.0
libtpu: 0.0.40
codegen_flags: <defaults>
</compile_context>

<pallas_src>
import math
import jax
import jax.numpy as jnp
from jax.experimental import pallas as pl
from jax.experimental.pallas import tpu as pltpu


_EPS = 1e-8
_SMOOTH = 10.0
_LEAK = 0.1


def _softmax_last(x):
    m = jnp.max(x, axis=-1, keepdims=True)
    e = jnp.exp(x - m)
    # denominator reciprocal on the EUP (free slot)
    return e * pl.reciprocal(jnp.sum(e, axis=-1, keepdims=True), approx=True)


def _l2norm_last(x):
    return x * jax.lax.rsqrt(jnp.sum(x * x, axis=-1, keepdims=True) + _EPS * _EPS)


def _leaky_relu(x, slope=_LEAK):
    return jnp.where(x >= 0, x, slope * x)


def _reason_i2t_kernel(cap_ref, mask_ref, img_ref,
                       simW_ref, wqk_ref, bias_s_ref, w1_ref, head_ref,
                       sim_ref, vfeat_ref, tfeat_ref):
    cap = cap_ref[0]        # (Lmax, d)      caption words (zero-padded past cap_len)
    mask2 = mask_ref[0]     # (1, Lmax)      1.0 valid word / 0.0 padding
    mask3 = mask_ref[...]   # (1, 1, Lmax)
    imgs = img_ref[...]     # (n_img, R, d)  ALL images, VMEM resident

    n_img, R, d = imgs.shape
    Lmax = cap.shape[0]
    sim_dim = simW_ref.shape[1]
    hid_dim = w1_ref.shape[1]

    cap_b = jnp.broadcast_to(cap[None], (n_img, Lmax, d))

    # ---- weighted_Features: cross attention, batched over all images --------
    # Both orientations straight from the MXU (no XLU transposes).
    attn_lr = jnp.einsum('nld,nrd->nlr', cap_b, imgs,
                         preferred_element_type=jnp.float32)       # (n, L, R)
    attn_rl = jnp.einsum('nrd,nld->nrl', imgs, cap_b,
                         preferred_element_type=jnp.float32)       # (n, R, L)
    a_lr = _leaky_relu(attn_lr)
    a_rl = _leaky_relu(attn_rl)

    # l2norm over regions (per word)  ->  masked softmax over words
    inv_nr = jax.lax.rsqrt(jnp.sum(a_rl * a_rl, axis=1, keepdims=True)
                           + _EPS * _EPS)                          # (n, 1, L)
    logits_a = a_rl * inv_nr * _SMOOTH + (mask3 - 1.0) * 1e9       # (n, R, L)
    attn_A = _softmax_last(logits_a)                               # (n, R, L)
    wtf = jnp.einsum('nrl,nld->nrd', attn_A, cap_b,
                     preferred_element_type=jnp.float32)           # (n, R, d)

    # l2norm over words (per region)  ->  softmax over regions
    inv_nw = jax.lax.rsqrt(jnp.sum(a_lr * a_lr, axis=1, keepdims=True)
                           + _EPS * _EPS)                          # (n, 1, R)
    attn_B = _softmax_last(a_lr * inv_nw * _SMOOTH)                # (n, L, R)
    wvf = jnp.einsum('nlr,nrd->nld', attn_B, imgs,
                     preferred_element_type=jnp.float32)           # (n, L, d)

    # ---- fused feature reductions (no per-pair HBM traffic) -----------------
    # visual_features contribution: mean over (images, regions) of wtf
    vsum = jnp.sum(jnp.sum(wtf, axis=0), axis=0, keepdims=True)    # (1, d)
    vfeat_ref[0] = vsum * (1.0 / (n_img * R))

    # textual_features contribution: mean over images, masked mean over words
    wsum = jnp.sum(wvf, axis=0)                                    # (L, d)
    cap_len = jnp.sum(mask2, axis=-1, keepdims=True)               # (1, 1)
    tfeat_ref[0] = (jnp.dot(mask2, wsum, preferred_element_type=jnp.float32)
                    * (1.0 / n_img)) / cap_len                     # (1, d)

    # ---- i2t similarity path: flattened (n_img*R, .) GEMMs ------------------
    sm = (wtf - imgs) ** 2                                         # (n, R, d)
    x = sm.reshape(n_img * R, d)
    x = jnp.dot(x, simW_ref[...], preferred_element_type=jnp.float32) + bias_s_ref[0]
    x = _l2norm_last(x)                                            # (nR, S)

    for l in range(3):   # 3 x GraphReasoning (weights shared across images)
        q = jnp.dot(x, wqk_ref[l], preferred_element_type=jnp.float32) + bias_s_ref[1 + l]
        k = jnp.dot(x, wqk_ref[3 + l], preferred_element_type=jnp.float32) + bias_s_ref[4 + l]
        q3 = q.reshape(n_img, R, sim_dim)
        k3 = k.reshape(n_img, R, sim_dim)
        x3 = x.reshape(n_img, R, sim_dim)
        edge = _softmax_last(jnp.einsum('nrs,nts->nrt', q3, k3,
                                        preferred_element_type=jnp.float32))  # (n,R,R)
        x3 = jnp.einsum('nrt,nts->nrs', edge, x3,
                        preferred_element_type=jnp.float32) + x3
        x = x3.reshape(n_img * R, sim_dim)

    head = head_ref[...]                 # (2, hid): row 0 = b1, row 1 = w2 (out_dim == 1)
    h = jnp.tanh(jnp.dot(x, w1_ref[...], preferred_element_type=jnp.float32) + head[0:1])
    h3 = h.reshape(n_img, R, hid_dim)
    hsum = jnp.sum(h3, axis=1)                                     # (n, hid)
    # out_dim == 1 head done on the VPU, with the mean over R folded in.
    pair = jnp.sum(hsum * head[1:2], axis=-1, keepdims=True)       # (n, 1)
    sim_ref[0] = pair * (1.0 / R)


def reason_i2t_forward(images, captions, cap_lens, params):
    """images: (n_image, R, d); captions: (n_caption, Lmax, d); cap_lens: (n_caption,) int."""
    n_image, R, d = images.shape
    n_caption, Lmax, _ = captions.shape
    out_dim = params["w2"].shape[0]
    assert out_dim == 1, "sim_eval head of Reason_i2t has out_dim == 1"

    mask = (jnp.arange(Lmax)[None, :] < cap_lens[:, None]).astype(jnp.float32)  # (nc, L)
    captions = captions * mask[:, :, None]      # zero padded words (== captions[i, :n_word])
    mask_in = mask[:, None, :]                  # (nc, 1, L)

    # Pre-transposed / packed parameters (fewer pallas inputs, no in-kernel .T)
    simW_t = params["simW"].T                                                   # (d, S)
    wqk_t = jnp.concatenate([jnp.swapaxes(params["wq"], 1, 2),
                             jnp.swapaxes(params["wk"], 1, 2)], axis=0)         # (6, S, S)
    bias_s = jnp.concatenate([params["simb"][None],
                              params["bq"], params["bk"]], axis=0)              # (7, 1, S)
    w1_t = params["w1"].T                                                       # (S, hid)
    head = jnp.concatenate([params["b1"], params["w2"]], axis=0)                # (2, hid)
    b2 = params["b2"][0, 0]

    def full(arr):
        zeros = (0,) * arr.ndim
        return pl.BlockSpec(arr.shape, lambda i, _z=zeros: _z)

    # TODO(synk): for very large n_image*R, tile the image axis (last grid axis,
    # "arbitrary", VMEM accumulators) instead of keeping all images resident.
    grid = (n_caption,)
    in_specs = [
        pl.BlockSpec((1, Lmax, d), lambda i: (i, 0, 0)),     # caption block
        pl.BlockSpec((1, 1, Lmax), lambda i: (i, 0, 0)),     # word mask
        full(images),                                        # all images, resident
        full(simW_t), full(wqk_t), full(bias_s), full(w1_t), full(head),
    ]
    out_specs = [
        pl.BlockSpec((1, n_image, 1), lambda i: (i, 0, 0)),  # per-pair similarity mean
        pl.BlockSpec((1, 1, d), lambda i: (i, 0, 0)),        # visual feature row
        pl.BlockSpec((1, 1, d), lambda i: (i, 0, 0)),        # textual feature row
    ]
    out_shape = [
        jax.ShapeDtypeStruct((n_caption, n_image, 1), jnp.float32),
        jax.ShapeDtypeStruct((n_caption, 1, d), jnp.float32),
        jax.ShapeDtypeStruct((n_caption, 1, d), jnp.float32),
    ]

    sim_out, vfeat_out, tfeat_out = pl.pallas_call(
        _reason_i2t_kernel,
        grid=grid,
        in_specs=in_specs,
        out_specs=out_specs,
        out_shape=out_shape,
        compiler_params=pltpu.CompilerParams(dimension_semantics=("parallel",)),
    )(captions, mask_in, images, simW_t, wqk_t, bias_s, w1_t, head)

    similarities = (sim_out[:, :, 0] + b2).T          # (n_image, n_caption)
    visual_features = vfeat_out[:, 0, :]              # (n_caption, d)
    textual_features = tfeat_out[:, 0, :]             # (n_caption, d)
    return similarities, visual_features, textual_features


def init_params(key, embed_size, sim_dim, hid_dim, out_dim):
    """Deterministic synthetic init (xavier-uniform weights, zero biases).
    weight_norm layers are represented by their equivalent plain weights."""
    ks = jax.random.split(key, 9)

    def xavier(k, out_f, in_f):
        r = math.sqrt(6.0) / math.sqrt(in_f + out_f)
        return jax.random.uniform(k, (out_f, in_f), jnp.float32, -r, r)

    return {
        "simW": xavier(ks[0], sim_dim, embed_size),
        "simb": jnp.zeros((1, sim_dim), jnp.float32),
        "wq": jnp.stack([xavier(ks[1 + l], sim_dim, sim_dim) for l in range(3)]),
        "bq": jnp.zeros((3, 1, sim_dim), jnp.float32),
        "wk": jnp.stack([xavier(ks[4 + l], sim_dim, sim_dim) for l in range(3)]),
        "bk": jnp.zeros((3, 1, sim_dim), jnp.float32),
        "w1": xavier(ks[7], hid_dim, sim_dim),
        "b1": jnp.zeros((1, hid_dim), jnp.float32),
        "w2": xavier(ks[8], out_dim, hid_dim),
        "b2": jnp.zeros((1, out_dim), jnp.float32),
    }


if __name__ == "__main__":
    key = jax.random.PRNGKey(0)
    n_image, n_caption = 2, 3
    num_regions, Lmax = 16, 8
    embed_size, sim_dim, hid_dim, out_dim = 32, 32, 16, 1

    k_img, k_cap, k_par = jax.random.split(key, 3)
    images = jax.random.normal(k_img, (n_image, num_regions, embed_size), jnp.float32)
    captions = jax.random.normal(k_cap, (n_caption, Lmax, embed_size), jnp.float32)
    cap_lens = jnp.array([5, 8, 3], dtype=jnp.int32)
    params = init_params(k_par, embed_size, sim_dim, hid_dim, out_dim)

    sims, vfeat, tfeat = reason_i2t_forward(images, captions, cap_lens, params)
    jax.block_until_ready((sims, vfeat, tfeat))

    assert sims.shape == (n_image, n_caption)
    assert vfeat.shape == (n_caption, embed_size)
    assert tfeat.shape == (n_caption, embed_size)
    assert bool(jnp.all(jnp.isfinite(sims)))
    assert bool(jnp.all(jnp.isfinite(vfeat)))
    assert bool(jnp.all(jnp.isfinite(tfeat)))
    print("KERNEL_OK")
</pallas_src>

<mosaic_0001>
module attributes {stable_mosaic.version = 11 : i64} {
  func.func @_reason_i2t_kernel(%arg0: i32, %arg1: memref<1x8x32xf32, #tpu.memory_space<vmem>>, %arg2: memref<1x1x8xf32, #tpu.memory_space<vmem>>, %arg3: memref<2x16x32xf32, #tpu.memory_space<vmem>>, %arg4: memref<32x32xf32, #tpu.memory_space<vmem>>, %arg5: memref<6x32x32xf32, #tpu.memory_space<vmem>>, %arg6: memref<7x1x32xf32, #tpu.memory_space<vmem>>, %arg7: memref<32x16xf32, #tpu.memory_space<vmem>>, %arg8: memref<2x16xf32, #tpu.memory_space<vmem>>, %arg9: memref<1x2x1xf32, #tpu.memory_space<vmem>>, %arg10: memref<1x1x32xf32, #tpu.memory_space<vmem>>, %arg11: memref<1x1x32xf32, #tpu.memory_space<vmem>>) attributes {dimension_semantics = [#tpu.dimension_semantics<parallel>], iteration_bounds = array<i64: 3>, scalar_prefetch = 0 : i64, scratch_operands = 0 : i64, tpu.core_type = #tpu.core_type<tc>, window_params = [{transform_indices = @transform_0, window_bounds = array<i64: 1, 8, 32>}, {transform_indices = @transform_1, window_bounds = array<i64: 1, 1, 8>}, {pipeline_mode = #tpu.pipeline_mode<synchronous>, transform_indices = @transform_2, window_bounds = array<i64: 2, 16, 32>}, {pipeline_mode = #tpu.pipeline_mode<synchronous>, transform_indices = @transform_3, window_bounds = array<i64: 32, 32>}, {pipeline_mode = #tpu.pipeline_mode<synchronous>, transform_indices = @transform_4, window_bounds = array<i64: 6, 32, 32>}, {pipeline_mode = #tpu.pipeline_mode<synchronous>, transform_indices = @transform_5, window_bounds = array<i64: 7, 1, 32>}, {pipeline_mode = #tpu.pipeline_mode<synchronous>, transform_indices = @transform_6, window_bounds = array<i64: 32, 16>}, {pipeline_mode = #tpu.pipeline_mode<synchronous>, transform_indices = @transform_7, window_bounds = array<i64: 2, 16>}, {transform_indices = @transform_8, window_bounds = array<i64: 1, 2, 1>}, {transform_indices = @transform_9, window_bounds = array<i64: 1, 1, 32>}, {transform_indices = @transform_10, window_bounds = array<i64: 1, 1, 32>}]} {
    %c0 = arith.constant 0 : index
    %c0_0 = arith.constant 0 : index
    %c0_1 = arith.constant 0 : index
    %0 = vector.load %arg1[%c0, %c0_0, %c0_1] : memref<1x8x32xf32, #tpu.memory_space<vmem>>, vector<1x8x32xf32>
    %1 = vector.shape_cast %0 : vector<1x8x32xf32> to vector<8x32xf32>
    %c0_2 = arith.constant 0 : index
    %c0_3 = arith.constant 0 : index
    %c0_4 = arith.constant 0 : index
    %2 = vector.load %arg2[%c0_2, %c0_3, %c0_4] : memref<1x1x8xf32, #tpu.memory_space<vmem>>, vector<1x1x8xf32>
    %3 = vector.shape_cast %2 : vector<1x1x8xf32> to vector<1x8xf32>
    %c0_5 = arith.constant 0 : index
    %c0_6 = arith.constant 0 : index
    %c0_7 = arith.constant 0 : index
    %4 = vector.load %arg2[%c0_5, %c0_6, %c0_7] : memref<1x1x8xf32, #tpu.memory_space<vmem>>, vector<1x1x8xf32>
    %c0_8 = arith.constant 0 : index
    %c0_9 = arith.constant 0 : index
    %c0_10 = arith.constant 0 : index
    %5 = vector.load %arg3[%c0_8, %c0_9, %c0_10] : memref<2x16x32xf32, #tpu.memory_space<vmem>>, vector<2x16x32xf32>
    %6 = vector.shape_cast %1 : vector<8x32xf32> to vector<1x8x32xf32>
    %7 = vector.shape_cast %6 : vector<1x8x32xf32> to vector<1x8x32xf32>
    %8 = vector.broadcast %7 : vector<1x8x32xf32> to vector<2x8x32xf32>
    "tpu.trace_start"() <{level = 10 : i32, message = "nld,nrd->nlr"}> : () -> ()
    %cst = arith.constant dense<0.000000e+00> : vector<2x8x16xf32>
    %9 = tpu.matmul %8, %5, %cst {dimension_numbers = #tpu.dot_dimension_numbers<[2], [2], [1], [1], [0, 0, 0, 1, 1, 1], [0], [0]>} : vector<2x8x32xf32>, vector<2x16x32xf32>, vector<2x8x16xf32> -> vector<2x8x16xf32>
    "tpu.trace_stop"() : () -> ()
    "tpu.trace_start"() <{level = 10 : i32, message = "nrd,nld->nrl"}> : () -> ()
    %cst_11 = arith.constant dense<0.000000e+00> : vector<2x16x8xf32>
    %10 = tpu.matmul %5, %8, %cst_11 {dimension_numbers = #tpu.dot_dimension_numbers<[2], [2], [1], [1], [0, 0, 0, 1, 1, 1], [0], [0]>} : vector<2x16x32xf32>, vector<2x8x32xf32>, vector<2x16x8xf32> -> vector<2x16x8xf32>
    %cst_12 = arith.constant 0.000000e+00 : f32
    "tpu.trace_stop"() : () -> ()
    %11 = vector.broadcast %cst_12 : f32 to vector<2x8x16xf32>
    %12 = arith.cmpf oge, %9, %11 : vector<2x8x16xf32>
    %cst_13 = arith.constant 1.000000e-01 : f32
    %13 = vector.broadcast %cst_13 : f32 to vector<2x8x16xf32>
    %14 = arith.mulf %13, %9 : vector<2x8x16xf32>
    %15 = arith.select %12, %9, %14 : vector<2x8x16xi1>, vector<2x8x16xf32>
    %cst_14 = arith.constant 0.000000e+00 : f32
    %16 = vector.broadcast %cst_14 : f32 to vector<2x16x8xf32>
    %17 = arith.cmpf oge, %10, %16 : vector<2x16x8xf32>
    %cst_15 = arith.constant 1.000000e-01 : f32
    %18 = vector.broadcast %cst_15 : f32 to vector<2x16x8xf32>
    %19 = arith.mulf %18, %10 : vector<2x16x8xf32>
    %20 = arith.select %17, %10, %19 : vector<2x16x8xi1>, vector<2x16x8xf32>
    %21 = arith.mulf %20, %20 : vector<2x16x8xf32>
    %cst_16 = arith.constant dense<0.000000e+00> : vector<2x8xf32>
    %22 = vector.multi_reduction <add>, %21, %cst_16 [1] : vector<2x16x8xf32> to vector<2x8xf32>
    %23 = vector.shape_cast %22 : vector<2x8xf32> to vector<2x1x8xf32>
    %cst_17 = arith.constant 1.000000e-16 : f32
    %24 = vector.broadcast %cst_17 : f32 to vector<2x1x8xf32>
    %25 = arith.addf %23, %24 : vector<2x1x8xf32>
    %26 = math.rsqrt %25 : vector<2x1x8xf32>
    %27 = vector.broadcast %26 : vector<2x1x8xf32> to vector<2x16x8xf32>
    %28 = arith.mulf %20, %27 : vector<2x16x8xf32>
    %cst_18 = arith.constant 1.000000e+01 : f32
    %29 = vector.broadcast %cst_18 : f32 to vector<2x16x8xf32>
    %30 = arith.mulf %28, %29 : vector<2x16x8xf32>
    %cst_19 = arith.constant 1.000000e+00 : f32
    %31 = vector.broadcast %cst_19 : f32 to vector<1x1x8xf32>
    %32 = arith.subf %4, %31 : vector<1x1x8xf32>
    %cst_20 = arith.constant 1.000000e+09 : f32
    %33 = vector.broadcast %cst_20 : f32 to vector<1x1x8xf32>
    %34 = arith.mulf %32, %33 : vector<1x1x8xf32>
    %35 = vector.broadcast %34 : vector<1x1x8xf32> to vector<2x16x8xf32>
    %36 = arith.addf %30, %35 : vector<2x16x8xf32>
    %cst_21 = arith.constant dense<0xFF800000> : vector<2x16xf32>
    %37 = vector.multi_reduction <maximumf>, %36, %cst_21 [2] : vector<2x16x8xf32> to vector<2x16xf32>
    %38 = vector.shape_cast %37 : vector<2x16xf32> to vector<2x16x1xf32>
    %39 = vector.broadcast %38 : vector<2x16x1xf32> to vector<2x16x8xf32>
    %40 = arith.subf %36, %39 : vector<2x16x8xf32>
    %41 = math.exp %40 : vector<2x16x8xf32>
    %cst_22 = arith.constant dense<0.000000e+00> : vector<2x16xf32>
    %42 = vector.multi_reduction <add>, %41, %cst_22 [2] : vector<2x16x8xf32> to vector<2x16xf32>
    %43 = vector.shape_cast %42 : vector<2x16xf32> to vector<2x16x1xf32>
    %44 = tpu.reciprocal %43 {approx = true} : vector<2x16x1xf32> -> vector<2x16x1xf32>
    %45 = vector.broadcast %44 : vector<2x16x1xf32> to vector<2x16x8xf32>
    %46 = arith.mulf %41, %45 : vector<2x16x8xf32>
    "tpu.trace_start"() <{level = 10 : i32, message = "nrl,nld->nrd"}> : () -> ()
    %cst_23 = arith.constant dense<0.000000e+00> : vector<2x16x32xf32>
    %47 = tpu.matmul %46, %8, %cst_23 {dimension_numbers = #tpu.dot_dimension_numbers<[2], [1], [1], [2], [0, 0, 0, 1, 1, 2], [0], [0]>} : vector<2x16x8xf32>, vector<2x8x32xf32>, vector<2x16x32xf32> -> vector<2x16x32xf32>
    "tpu.trace_stop"() : () -> ()
    %48 = arith.mulf %15, %15 : vector<2x8x16xf32>
    %cst_24 = arith.constant dense<0.000000e+00> : vector<2x16xf32>
    %49 = vector.multi_reduction <add>, %48, %cst_24 [1] : vector<2x8x16xf32> to vector<2x16xf32>
    %50 = vector.shape_cast %49 : vector<2x16xf32> to vector<2x1x16xf32>
    %cst_25 = arith.constant 1.000000e-16 : f32
    %51 = vector.broadcast %cst_25 : f32 to vector<2x1x16xf32>
    %52 = arith.addf %50, %51 : vector<2x1x16xf32>
    %53 = math.rsqrt %52 : vector<2x1x16xf32>
    %54 = vector.broadcast %53 : vector<2x1x16xf32> to vector<2x8x16xf32>
    %55 = arith.mulf %15, %54 : vector<2x8x16xf32>
    %cst_26 = arith.constant 1.000000e+01 : f32
    %56 = vector.broadcast %cst_26 : f32 to vector<2x8x16xf32>
    %57 = arith.mulf %55, %56 : vector<2x8x16xf32>
    %cst_27 = arith.constant dense<0xFF800000> : vector<2x8xf32>
    %58 = vector.multi_reduction <maximumf>, %57, %cst_27 [2] : vector<2x8x16xf32> to vector<2x8xf32>
    %59 = vector.shape_cast %58 : vector<2x8xf32> to vector<2x8x1xf32>
    %60 = vector.broadcast %59 : vector<2x8x1xf32> to vector<2x8x16xf32>
    %61 = arith.subf %57, %60 : vector<2x8x16xf32>
    %62 = math.exp %61 : vector<2x8x16xf32>
    %cst_28 = arith.constant dense<0.000000e+00> : vector<2x8xf32>
    %63 = vector.multi_reduction <add>, %62, %cst_28 [2] : vector<2x8x16xf32> to vector<2x8xf32>
    %64 = vector.shape_cast %63 : vector<2x8xf32> to vector<2x8x1xf32>
    %65 = tpu.reciprocal %64 {approx = true} : vector<2x8x1xf32> -> vector<2x8x1xf32>
    %66 = vector.broadcast %65 : vector<2x8x1xf32> to vector<2x8x16xf32>
    %67 = arith.mulf %62, %66 : vector<2x8x16xf32>
    "tpu.trace_start"() <{level = 10 : i32, message = "nlr,nrd->nld"}> : () -> ()
    %cst_29 = arith.constant dense<0.000000e+00> : vector<2x8x32xf32>
    %68 = tpu.matmul %67, %5, %cst_29 {dimension_numbers = #tpu.dot_dimension_numbers<[2], [1], [1], [2], [0, 0, 0, 1, 1, 2], [0], [0]>} : vector<2x8x16xf32>, vector<2x16x32xf32>, vector<2x8x32xf32> -> vector<2x8x32xf32>
    "tpu.trace_stop"() : () -> ()
    %cst_30 = arith.constant dense<0.000000e+00> : vector<16x32xf32>
    %69 = vector.multi_reduction <add>, %47, %cst_30 [0] : vector<2x16x32xf32> to vector<16x32xf32>
    %cst_31 = arith.constant dense<0.000000e+00> : vector<32xf32>
    %70 = vector.multi_reduction <add>, %69, %cst_31 [0] : vector<16x32xf32> to vector<32xf32>
    %71 = vector.shape_cast %70 : vector<32xf32> to vector<1x32xf32>
    %cst_32 = arith.constant 3.125000e-02 : f32
    %72 = vector.broadcast %cst_32 : f32 to vector<1x32xf32>
    %73 = arith.mulf %71, %72 : vector<1x32xf32>
    %c0_33 = arith.constant 0 : index
    %c0_34 = arith.constant 0 : index
    %c0_35 = arith.constant 0 : index
    %74 = vector.load %arg10[%c0_33, %c0_34, %c0_35] : memref<1x1x32xf32, #tpu.memory_space<vmem>>, vector<1x1x32xf32>
    %75 = vector.shape_cast %74 : vector<1x1x32xf32> to vector<1x32xf32>
    %76 = vector.shape_cast %73 : vector<1x32xf32> to vector<1x1x32xf32>
    tpu.vector_store %arg10[%c0_33, %c0_34, %c0_35], %76 {strides = array<i32>} : memref<1x1x32xf32, #tpu.memory_space<vmem>>, vector<1x1x32xf32>,
    %cst_36 = arith.constant dense<0.000000e+00> : vector<8x32xf32>
    %77 = vector.multi_reduction <add>, %68, %cst_36 [0] : vector<2x8x32xf32> to vector<8x32xf32>
    %cst_37 = arith.constant dense<0.000000e+00> : vector<1xf32>
    %78 = vector.multi_reduction <add>, %3, %cst_37 [1] : vector<1x8xf32> to vector<1xf32>
    %79 = vector.shape_cast %78 : vector<1xf32> to vector<1x1xf32>
    %cst_38 = arith.constant dense<0.000000e+00> : vector<1x32xf32>
    %80 = tpu.matmul %3, %77, %cst_38 {dimension_numbers = #tpu.dot_dimension_numbers<[1], [0], [0], [1], [0, 0, 1, 1], [], []>} : vector<1x8xf32>, vector<8x32xf32>, vector<1x32xf32> -> vector<1x32xf32>
    %cst_39 = arith.constant 5.000000e-01 : f32
    %81 = vector.broadcast %cst_39 : f32 to vector<1x32xf32>
    %82 = arith.mulf %80, %81 : vector<1x32xf32>
    %83 = vector.broadcast %79 : vector<1x1xf32> to vector<1x32xf32>
    %84 = arith.divf %82, %83 : vector<1x32xf32>
    %c0_40 = arith.constant 0 : index
    %c0_41 = arith.constant 0 : index
    %c0_42 = arith.constant 0 : index
    %85 = vector.load %arg11[%c0_40, %c0_41, %c0_42] : memref<1x1x32xf32, #tpu.memory_space<vmem>>, vector<1x1x32xf32>
    %86 = vector.shape_cast %85 : vector<1x1x32xf32> to vector<1x32xf32>
    %87 = vector.shape_cast %84 : vector<1x32xf32> to vector<1x1x32xf32>
    tpu.vector_store %arg11[%c0_40, %c0_41, %c0_42], %87 {strides = array<i32>} : memref<1x1x32xf32, #tpu.memory_space<vmem>>, vector<1x1x32xf32>,
    %88 = arith.subf %47, %5 : vector<2x16x32xf32>
    %89 = arith.mulf %88, %88 : vector<2x16x32xf32>
    %90 = vector.shape_cast %89 : vector<2x16x32xf32> to vector<32x32xf32>
    %c0_43 = arith.constant 0 : index
    %c0_44 = arith.constant 0 : index
    %91 = vector.load %arg4[%c0_43, %c0_44] : memref<32x32xf32, #tpu.memory_space<vmem>>, vector<32x32xf32>
    %cst_45 = arith.constant dense<0.000000e+00> : vector<32x32xf32>
    %92 = tpu.matmul %90, %91, %cst_45 {dimension_numbers = #tpu.dot_dimension_numbers<[1], [0], [0], [1], [0, 0, 1, 1], [], []>} : vector<32x32xf32>, vector<32x32xf32>, vector<32x32xf32> -> vector<32x32xf32>
    %c0_46 = arith.constant 0 : index
    %c0_47 = arith.constant 0 : index
    %c0_48 = arith.constant 0 : index
    %93 = vector.load %arg6[%c0_46, %c0_47, %c0_48] : memref<7x1x32xf32, #tpu.memory_space<vmem>>, vector<1x1x32xf32>
    %94 = vector.shape_cast %93 : vector<1x1x32xf32> to vector<1x32xf32>
    %95 = vector.broadcast %94 : vector<1x32xf32> to vector<32x32xf32>
    %96 = arith.addf %92, %95 : vector<32x32xf32>
    %97 = arith.mulf %96, %96 : vector<32x32xf32>
    %cst_49 = arith.constant dense<0.000000e+00> : vector<32xf32>
    %98 = vector.multi_reduction <add>, %97, %cst_49 [1] : vector<32x32xf32> to vector<32xf32>
    %99 = vector.shape_cast %98 : vector<32xf32> to vector<32x1xf32>
    %cst_50 = arith.constant 1.000000e-16 : f32
    %100 = vector.broadcast %cst_50 : f32 to vector<32x1xf32>
    %101 = arith.addf %99, %100 : vector<32x1xf32>
    %102 = math.rsqrt %101 : vector<32x1xf32>
    %103 = vector.broadcast %102 : vector<32x1xf32> to vector<32x32xf32>
    %104 = arith.mulf %96, %103 : vector<32x32xf32>
    %c0_51 = arith.constant 0 : index
    %c0_52 = arith.constant 0 : index
    %c0_53 = arith.constant 0 : index
    %105 = vector.load %arg5[%c0_51, %c0_52, %c0_53] : memref<6x32x32xf32, #tpu.memory_space<vmem>>, vector<1x32x32xf32>
    %106 = vector.shape_cast %105 : vector<1x32x32xf32> to vector<32x32xf32>
    %cst_54 = arith.constant dense<0.000000e+00> : vector<32x32xf32>
    %107 = tpu.matmul %104, %106, %cst_54 {dimension_numbers = #tpu.dot_dimension_numbers<[1], [0], [0], [1], [0, 0, 1, 1], [], []>} : vector<32x32xf32>, vector<32x32xf32>, vector<32x32xf32> -> vector<32x32xf32>
    %c1 = arith.constant 1 : index
    %c0_55 = arith.constant 0 : index
    %c0_56 = arith.constant 0 : index
    %108 = vector.load %arg6[%c1, %c0_55, %c0_56] : memref<7x1x32xf32, #tpu.memory_space<vmem>>, vector<1x1x32xf32>
    %109 = vector.shape_cast %108 : vector<1x1x32xf32> to vector<1x32xf32>
    %110 = vector.broadcast %109 : vector<1x32xf32> to vector<32x32xf32>
    %111 = arith.addf %107, %110 : vector<32x32xf32>
    %c3 = arith.constant 3 : index
    %c0_57 = arith.constant 0 : index
    %c0_58 = arith.constant 0 : index
    %112 = vector.load %arg5[%c3, %c0_57, %c0_58] : memref<6x32x32xf32, #tpu.memory_space<vmem>>, vector<1x32x32xf32>
    %113 = vector.shape_cast %112 : vector<1x32x32xf32> to vector<32x32xf32>
    %cst_59 = arith.constant dense<0.000000e+00> : vector<32x32xf32>
    %114 = tpu.matmul %104, %113, %cst_59 {dimension_numbers = #tpu.dot_dimension_numbers<[1], [0], [0], [1], [0, 0, 1, 1], [], []>} : vector<32x32xf32>, vector<32x32xf32>, vector<32x32xf32> -> vector<32x32xf32>
    %c4 = arith.constant 4 : index
    %c0_60 = arith.constant 0 : index
    %c0_61 = arith.constant 0 : index
    %115 = vector.load %arg6[%c4, %c0_60, %c0_61] : memref<7x1x32xf32, #tpu.memory_space<vmem>>, vector<1x1x32xf32>
    %116 = vector.shape_cast %115 : vector<1x1x32xf32> to vector<1x32xf32>
    %117 = vector.broadcast %116 : vector<1x32xf32> to vector<32x32xf32>
    %118 = arith.addf %114, %117 : vector<32x32xf32>
    %119 = vector.shape_cast %111 : vector<32x32xf32> to vector<2x16x32xf32>
    %120 = vector.shape_cast %118 : vector<32x32xf32> to vector<2x16x32xf32>
    %121 = vector.shape_cast %104 : vector<32x32xf32> to vector<2x16x32xf32>
    "tpu.trace_start"() <{level = 10 : i32, message = "nrs,nts->nrt"}> : () -> ()
    %cst_62 = arith.constant dense<0.000000e+00> : vector<2x16x16xf32>
    %122 = tpu.matmul %119, %120, %cst_62 {dimension_numbers = #tpu.dot_dimension_numbers<[2], [2], [1], [1], [0, 0, 0, 1, 1, 1], [0], [0]>} : vector<2x16x32xf32>, vector<2x16x32xf32>, vector<2x16x16xf32> -> vector<2x16x16xf32>
    "tpu.trace_stop"() : () -> ()
    %cst_63 = arith.constant dense<0xFF800000> : vector<2x16xf32>
    %123 = vector.multi_reduction <maximumf>, %122, %cst_63 [2] : vector<2x16x16xf32> to vector<2x16xf32>
    %124 = vector.shape_cast %123 : vector<2x16xf32> to vector<2x16x1xf32>
    %125 = vector.broadcast %124 : vector<2x16x1xf32> to vector<2x16x16xf32>
    %126 = arith.subf %122, %125 : vector<2x16x16xf32>
    %127 = math.exp %126 : vector<2x16x16xf32>
    %cst_64 = arith.constant dense<0.000000e+00> : vector<2x16xf32>
    %128 = vector.multi_reduction <add>, %127, %cst_64 [2] : vector<2x16x16xf32> to vector<2x16xf32>
    %129 = vector.shape_cast %128 : vector<2x16xf32> to vector<2x16x1xf32>
    %130 = tpu.reciprocal %129 {approx = true} : vector<2x16x1xf32> -> vector<2x16x1xf32>
    %131 = vector.broadcast %130 : vector<2x16x1xf32> to vector<2x16x16xf32>
    %132 = arith.mulf %127, %131 : vector<2x16x16xf32>
    "tpu.trace_start"() <{level = 10 : i32, message = "nrt,nts->nrs"}> : () -> ()
    %cst_65 = arith.constant dense<0.000000e+00> : vector<2x16x32xf32>
    %133 = tpu.matmul %132, %121, %cst_65 {dimension_numbers = #tpu.dot_dimension_numbers<[2], [1], [1], [2], [0, 0, 0, 1, 1, 2], [0], [0]>} : vector<2x16x16xf32>, vector<2x16x32xf32>, vector<2x16x32xf32> -> vector<2x16x32xf32>
    "tpu.trace_stop"() : () -> ()
    %134 = arith.addf %133, %121 : vector<2x16x32xf32>
    %135 = vector.shape_cast %134 : vector<2x16x32xf32> to vector<32x32xf32>
    %c1_66 = arith.constant 1 : index
    %c0_67 = arith.constant 0 : index
    %c0_68 = arith.constant 0 : index
    %136 = vector.load %arg5[%c1_66, %c0_67, %c0_68] : memref<6x32x32xf32, #tpu.memory_space<vmem>>, vector<1x32x32xf32>
    %137 = vector.shape_cast %136 : vector<1x32x32xf32> to vector<32x32xf32>
    %cst_69 = arith.constant dense<0.000000e+00> : vector<32x32xf32>
    %138 = tpu.matmul %135, %137, %cst_69 {dimension_numbers = #tpu.dot_dimension_numbers<[1], [0], [0], [1], [0, 0, 1, 1], [], []>} : vector<32x32xf32>, vector<32x32xf32>, vector<32x32xf32> -> vector<32x32xf32>
    %c2 = arith.constant 2 : index
    %c0_70 = arith.constant 0 : index
    %c0_71 = arith.constant 0 : index
    %139 = vector.load %arg6[%c2, %c0_70, %c0_71] : memref<7x1x32xf32, #tpu.memory_space<vmem>>, vector<1x1x32xf32>
    %140 = vector.shape_cast %139 : vector<1x1x32xf32> to vector<1x32xf32>
    %141 = vector.broadcast %140 : vector<1x32xf32> to vector<32x32xf32>
    %142 = arith.addf %138, %141 : vector<32x32xf32>
    %c4_72 = arith.constant 4 : index
    %c0_73 = arith.constant 0 : index
    %c0_74 = arith.constant 0 : index
    %143 = vector.load %arg5[%c4_72, %c0_73, %c0_74] : memref<6x32x32xf32, #tpu.memory_space<vmem>>, vector<1x32x32xf32>
    %144 = vector.shape_cast %143 : vector<1x32x32xf32> to vector<32x32xf32>
    %cst_75 = arith.constant dense<0.000000e+00> : vector<32x32xf32>
    %145 = tpu.matmul %135, %144, %cst_75 {dimension_numbers = #tpu.dot_dimension_numbers<[1], [0], [0], [1], [0, 0, 1, 1], [], []>} : vector<32x32xf32>, vector<32x32xf32>, vector<32x32xf32> -> vector<32x32xf32>
    %c5 = arith.constant 5 : index
    %c0_76 = arith.constant 0 : index
    %c0_77 = arith.constant 0 : index
    %146 = vector.load %arg6[%c5, %c0_76, %c0_77] : memref<7x1x32xf32, #tpu.memory_space<vmem>>, vector<1x1x32xf32>
    %147 = vector.shape_cast %146 : vector<1x1x32xf32> to vector<1x32xf32>
    %148 = vector.broadcast %147 : vector<1x32xf32> to vector<32x32xf32>
    %149 = arith.addf %145, %148 : vector<32x32xf32>
    %150 = vector.shape_cast %142 : vector<32x32xf32> to vector<2x16x32xf32>
    %151 = vector.shape_cast %149 : vector<32x32xf32> to vector<2x16x32xf32>
    %152 = vector.shape_cast %135 : vector<32x32xf32> to vector<2x16x32xf32>
    "tpu.trace_start"() <{level = 10 : i32, message = "nrs,nts->nrt"}> : () -> ()
    %cst_78 = arith.constant dense<0.000000e+00> : vector<2x16x16xf32>
    %153 = tpu.matmul %150, %151, %cst_78 {dimension_numbers = #tpu.dot_dimension_numbers<[2], [2], [1], [1], [0, 0, 0, 1, 1, 1], [0], [0]>} : vector<2x16x32xf32>, vector<2x16x32xf32>, vector<2x16x16xf32> -> vector<2x16x16xf32>
    "tpu.trace_stop"() : () -> ()
    %cst_79 = arith.constant dense<0xFF800000> : vector<2x16xf32>
    %154 = vector.multi_reduction <maximumf>, %153, %cst_79 [2] : vector<2x16x16xf32> to vector<2x16xf32>
    %155 = vector.shape_cast %154 : vector<2x16xf32> to vector<2x16x1xf32>
    %156 = vector.broadcast %155 : vector<2x16x1xf32> to vector<2x16x16xf32>
    %157 = arith.subf %153, %156 : vector<2x16x16xf32>
    %158 = math.exp %157 : vector<2x16x16xf32>
    %cst_80 = arith.constant dense<0.000000e+00> : vector<2x16xf32>
    %159 = vector.multi_reduction <add>, %158, %cst_80 [2] : vector<2x16x16xf32> to vector<2x16xf32>
    %160 = vector.shape_cast %159 : vector<2x16xf32> to vector<2x16x1xf32>
    %161 = tpu.reciprocal %160 {approx = true} : vector<2x16x1xf32> -> vector<2x16x1xf32>
    %162 = vector.broadcast %161 : vector<2x16x1xf32> to vector<2x16x16xf32>
    %163 = arith.mulf %158, %162 : vector<2x16x16xf32>
    "tpu.trace_start"() <{level = 10 : i32, message = "nrt,nts->nrs"}> : () -> ()
    %cst_81 = arith.constant dense<0.000000e+00> : vector<2x16x32xf32>
    %164 = tpu.matmul %163, %152, %cst_81 {dimension_numbers = #tpu.dot_dimension_numbers<[2], [1], [1], [2], [0, 0, 0, 1, 1, 2], [0], [0]>} : vector<2x16x16xf32>, vector<2x16x32xf32>, vector<2x16x32xf32> -> vector<2x16x32xf32>
    "tpu.trace_stop"() : () -> ()
    %165 = arith.addf %164, %152 : vector<2x16x32xf32>
    %166 = vector.shape_cast %165 : vector<2x16x32xf32> to vector<32x32xf32>
    %c2_82 = arith.constant 2 : index
    %c0_83 = arith.constant 0 : index
    %c0_84 = arith.constant 0 : index
    %167 = vector.load %arg5[%c2_82, %c0_83, %c0_84] : memref<6x32x32xf32, #tpu.memory_space<vmem>>, vector<1x32x32xf32>
    %168 = vector.shape_cast %167 : vector<1x32x32xf32> to vector<32x32xf32>
    %cst_85 = arith.constant dense<0.000000e+00> : vector<32x32xf32>
    %169 = tpu.matmul %166, %168, %cst_85 {dimension_numbers = #tpu.dot_dimension_numbers<[1], [0], [0], [1], [0, 0, 1, 1], [], []>} : vector<32x32xf32>, vector<32x32xf32>, vector<32x32xf32> -> vector<32x32xf32>
    %c3_86 = arith.constant 3 : index
    %c0_87 = arith.constant 0 : index
    %c0_88 = arith.constant 0 : index
    %170 = vector.load %arg6[%c3_86, %c0_87, %c0_88] : memref<7x1x32xf32, #tpu.memory_space<vmem>>, vector<1x1x32xf32>
    %171 = vector.shape_cast %170 : vector<1x1x32xf32> to vector<1x32xf32>
    %172 = vector.broadcast %171 : vector<1x32xf32> to vector<32x32xf32>
    %173 = arith.addf %169, %172 : vector<32x32xf32>
    %c5_89 = arith.constant 5 : index
    %c0_90 = arith.constant 0 : index
    %c0_91 = arith.constant 0 : index
    %174 = vector.load %arg5[%c5_89, %c0_90, %c0_91] : memref<6x32x32xf32, #tpu.memory_space<vmem>>, vector<1x32x32xf32>
    %175 = vector.shape_cast %174 : vector<1x32x32xf32> to vector<32x32xf32>
    %cst_92 = arith.constant dense<0.000000e+00> : vector<32x32xf32>
    %176 = tpu.matmul %166, %175, %cst_92 {dimension_numbers = #tpu.dot_dimension_numbers<[1], [0], [0], [1], [0, 0, 1, 1], [], []>} : vector<32x32xf32>, vector<32x32xf32>, vector<32x32xf32> -> vector<32x32xf32>
    %c6 = arith.constant 6 : index
    %c0_93 = arith.constant 0 : index
    %c0_94 = arith.constant 0 : index
    %177 = vector.load %arg6[%c6, %c0_93, %c0_94] : memref<7x1x32xf32, #tpu.memory_space<vmem>>, vector<1x1x32xf32>
    %178 = vector.shape_cast %177 : vector<1x1x32xf32> to vector<1x32xf32>
    %179 = vector.broadcast %178 : vector<1x32xf32> to vector<32x32xf32>
    %180 = arith.addf %176, %179 : vector<32x32xf32>
    %181 = vector.shape_cast %173 : vector<32x32xf32> to vector<2x16x32xf32>
    %182 = vector.shape_cast %180 : vector<32x32xf32> to vector<2x16x32xf32>
    %183 = vector.shape_cast %166 : vector<32x32xf32> to vector<2x16x32xf32>
    "tpu.trace_start"() <{level = 10 : i32, message = "nrs,nts->nrt"}> : () -> ()
    %cst_95 = arith.constant dense<0.000000e+00> : vector<2x16x16xf32>
    %184 = tpu.matmul %181, %182, %cst_95 {dimension_numbers = #tpu.dot_dimension_numbers<[2], [2], [1], [1], [0, 0, 0, 1, 1, 1], [0], [0]>} : vector<2x16x32xf32>, vector<2x16x32xf32>, vector<2x16x16xf32> -> vector<2x16x16xf32>
    "tpu.trace_stop"() : () -> ()
    %cst_96 = arith.constant dense<0xFF800000> : vector<2x16xf32>
    %185 = vector.multi_reduction <maximumf>, %184, %cst_96 [2] : vector<2x16x16xf32> to vector<2x16xf32>
    %186 = vector.shape_cast %185 : vector<2x16xf32> to vector<2x16x1xf32>
    %187 = vector.broadcast %186 : vector<2x16x1xf32> to vector<2x16x16xf32>
    %188 = arith.subf %184, %187 : vector<2x16x16xf32>
    %189 = math.exp %188 : vector<2x16x16xf32>
    %cst_97 = arith.constant dense<0.000000e+00> : vector<2x16xf32>
    %190 = vector.multi_reduction <add>, %189, %cst_97 [2] : vector<2x16x16xf32> to vector<2x16xf32>
    %191 = vector.shape_cast %190 : vector<2x16xf32> to vector<2x16x1xf32>
    %192 = tpu.reciprocal %191 {approx = true} : vector<2x16x1xf32> -> vector<2x16x1xf32>
    %193 = vector.broadcast %192 : vector<2x16x1xf32> to vector<2x16x16xf32>
    %194 = arith.mulf %189, %193 : vector<2x16x16xf32>
    "tpu.trace_start"() <{level = 10 : i32, message = "nrt,nts->nrs"}> : () -> ()
    %cst_98 = arith.constant dense<0.000000e+00> : vector<2x16x32xf32>
    %195 = tpu.matmul %194, %183, %cst_98 {dimension_numbers = #tpu.dot_dimension_numbers<[2], [1], [1], [2], [0, 0, 0, 1, 1, 2], [0], [0]>} : vector<2x16x16xf32>, vector<2x16x32xf32>, vector<2x16x32xf32> -> vector<2x16x32xf32>
    "tpu.trace_stop"() : () -> ()
    %196 = arith.addf %195, %183 : vector<2x16x32xf32>
    %197 = vector.shape_cast %196 : vector<2x16x32xf32> to vector<32x32xf32>
    %c0_99 = arith.constant 0 : index
    %c0_100 = arith.constant 0 : index
    %198 = vector.load %arg8[%c0_99, %c0_100] : memref<2x16xf32, #tpu.memory_space<vmem>>, vector<2x16xf32>
    %c0_101 = arith.constant 0 : index
    %c0_102 = arith.constant 0 : index
    %199 = vector.load %arg7[%c0_101, %c0_102] : memref<32x16xf32, #tpu.memory_space<vmem>>, vector<32x16xf32>
    %cst_103 = arith.constant dense<0.000000e+00> : vector<32x16xf32>
    %200 = tpu.matmul %197, %199, %cst_103 {dimension_numbers = #tpu.dot_dimension_numbers<[1], [0], [0], [1], [0, 0, 1, 1], [], []>} : vector<32x32xf32>, vector<32x16xf32>, vector<32x16xf32> -> vector<32x16xf32>
    %201 = vector.extract_strided_slice %198 {offsets = [0, 0], sizes = [1, 16], strides = [1, 1]} : vector<2x16xf32> to vector<1x16xf32>
    %202 = vector.broadcast %201 : vector<1x16xf32> to vector<32x16xf32>
    %203 = arith.addf %200, %202 : vector<32x16xf32>
    %204 = math.tanh %203 : vector<32x16xf32>
    %205 = vector.shape_cast %204 : vector<32x16xf32> to vector<2x16x16xf32>
    %cst_104 = arith.constant dense<0.000000e+00> : vector<2x16xf32>
    %206 = vector.multi_reduction <add>, %205, %cst_104 [1] : vector<2x16x16xf32> to vector<2x16xf32>
    %207 = vector.extract_strided_slice %198 {offsets = [1, 0], sizes = [1, 16], strides = [1, 1]} : vector<2x16xf32> to vector<1x16xf32>
    %208 = vector.broadcast %207 : vector<1x16xf32> to vector<2x16xf32>
    %209 = arith.mulf %206, %208 : vector<2x16xf32>
    %cst_105 = arith.constant dense<0.000000e+00> : vector<2xf32>
    %210 = vector.multi_reduction <add>, %209, %cst_105 [1] : vector<2x16xf32> to vector<2xf32>
    %211 = vector.shape_cast %210 : vector<2xf32> to vector<2x1xf32>
    %cst_106 = arith.constant 6.250000e-02 : f32
    %212 = vector.broadcast %cst_106 : f32 to vector<2x1xf32>
    %213 = arith.mulf %211, %212 : vector<2x1xf32>
    %c0_107 = arith.constant 0 : index
    %c0_108 = arith.constant 0 : index
    %c0_109 = arith.constant 0 : index
    %214 = vector.load %arg9[%c0_107, %c0_108, %c0_109] : memref<1x2x1xf32, #tpu.memory_space<vmem>>, vector<1x2x1xf32>
    %215 = vector.shape_cast %214 : vector<1x2x1xf32> to vector<2x1xf32>
    %216 = vector.shape_cast %213 : vector<2x1xf32> to vector<1x2x1xf32>
    tpu.vector_store %arg9[%c0_107, %c0_108, %c0_109], %216 {strides = array<i32>} : memref<1x2x1xf32, #tpu.memory_space<vmem>>, vector<1x2x1xf32>,
    return
  }
  func.func @transform_0(%arg0: i32) -> (i32, i32, i32) {
    %c0_i32 = arith.constant 0 : i32
    %c0_i32_0 = arith.constant 0 : i32
    %c0_i32_1 = arith.constant 0 : i32
    return %arg0, %c0_i32, %c0_i32_0 : i32, i32, i32
  }
  func.func @transform_1(%arg0: i32) -> (i32, i32, i32) {
    %c0_i32 = arith.constant 0 : i32
    %c0_i32_0 = arith.constant 0 : i32
    %c0_i32_1 = arith.constant 0 : i32
    return %arg0, %c0_i32, %c0_i32_0 : i32, i32, i32
  }
  func.func @transform_2(%arg0: i32) -> (i32, i32, i32) {
    %c0_i32 = arith.constant 0 : i32
    %c0_i32_0 = arith.constant 0 : i32
    %c0_i32_1 = arith.constant 0 : i32
    %c0_i32_2 = arith.constant 0 : i32
    return %c0_i32, %c0_i32_0, %c0_i32_1 : i32, i32, i32
  }
  func.func @transform_3(%arg0: i32) -> (i32, i32) {
    %c0_i32 = arith.constant 0 : i32
    %c0_i32_0 = arith.constant 0 : i32
    %c0_i32_1 = arith.constant 0 : i32
    return %c0_i32, %c0_i32_0 : i32, i32
  }
  func.func @transform_4(%arg0: i32) -> (i32, i32, i32) {
    %c0_i32 = arith.constant 0 : i32
    %c0_i32_0 = arith.constant 0 : i32
    %c0_i32_1 = arith.constant 0 : i32
    %c0_i32_2 = arith.constant 0 : i32
    return %c0_i32, %c0_i32_0, %c0_i32_1 : i32, i32, i32
  }
  func.func @transform_5(%arg0: i32) -> (i32, i32, i32) {
    %c0_i32 = arith.constant 0 : i32
    %c0_i32_0 = arith.constant 0 : i32
    %c0_i32_1 = arith.constant 0 : i32
    %c0_i32_2 = arith.constant 0 : i32
    return %c0_i32, %c0_i32_0, %c0_i32_1 : i32, i32, i32
  }
  func.func @transform_6(%arg0: i32) -> (i32, i32) {
    %c0_i32 = arith.constant 0 : i32
    %c0_i32_0 = arith.constant 0 : i32
    %c0_i32_1 = arith.constant 0 : i32
    return %c0_i32, %c0_i32_0 : i32, i32
  }
  func.func @transform_7(%arg0: i32) -> (i32, i32) {
    %c0_i32 = arith.constant 0 : i32
    %c0_i32_0 = arith.constant 0 : i32
    %c0_i32_1 = arith.constant 0 : i32
    return %c0_i32, %c0_i32_0 : i32, i32
  }
  func.func @transform_8(%arg0: i32) -> (i32, i32, i32) {
    %c0_i32 = arith.constant 0 : i32
    %c0_i32_0 = arith.constant 0 : i32
    %c0_i32_1 = arith.constant 0 : i32
    return %arg0, %c0_i32, %c0_i32_0 : i32, i32, i32
  }
  func.func @transform_9(%arg0: i32) -> (i32, i32, i32) {
    %c0_i32 = arith.constant 0 : i32
    %c0_i32_0 = arith.constant 0 : i32
    %c0_i32_1 = arith.constant 0 : i32
    return %arg0, %c0_i32, %c0_i32_0 : i32, i32, i32
  }
  func.func @transform_10(%arg0: i32) -> (i32, i32, i32) {
    %c0_i32 = arith.constant 0 : i32
    %c0_i32_0 = arith.constant 0 : i32
    %c0_i32_1 = arith.constant 0 : i32
    return %arg0, %c0_i32, %c0_i32_0 : i32, i32, i32
  }
}

</mosaic_0001>

<bundles_post_ra>
// kernel: tpu_custom_call.1
= control target key start
LH: loop header
LB: loop body
LE: loop exit
PB: predicated region body
PF: predicated region fallthrough
CT: control target
= control target key end

     0   :  { %s5050_s0 = inlined_call_operand.hbm [shape: f32[3,8,32], index: 0, kind: input, shape index: {}]   ;;  %s5051_s1 = inlined_call_operand.vmem [shape: f32[3,1,8], index: 1, kind: input, shape index: {}]   ;;  %s5052_s2 = inlined_call_operand.vmem [shape: f32[2,16,32], index: 2, kind: input, shape index: {}]   ;;  %s5053_s3 = inlined_call_operand.hbm [shape: f32[32,32], index: 3, kind: input, shape index: {}]   ;;  %s5054_s4 = inlined_call_operand.hbm [shape: f32[6,32,32], index: 4, kind: input, shape index: {}]   ;;  %s5055_s5 = inlined_call_operand.vmem [shape: f32[7,1,32], index: 5, kind: input, shape index: {}]   ;;  %s5056_s6 = inlined_call_operand.vmem [shape: f32[32,16], index: 6, kind: input, shape index: {}]   ;;  %s5057_s7 = inlined_call_operand.vmem [shape: f32[2,16], index: 7, kind: input, shape index: {}]   ;;  %s5058_s8 = inlined_call_operand.vmem [shape: f32[3,2,1], index: 8, kind: output, shape index: {0}]   ;;  %s5059_s9 = inlined_call_operand.hbm [shape: f32[3,1,32], index: 9, kind: output, shape index: {1}]   ;;  %s5060_s10 = inlined_call_operand.hbm [shape: f32[3,1,32], index: 10, kind: output, shape index: {2}]  }
   0x1   :  { %5069 = sst [smem:[#allocation18_spill]] %s5053_s3 }
   0x2   :  { %5070 = sst [smem:[#allocation19_spill]] %s5054_s4 }
   0x3   :  { %16 = vsyncpa [#allocation3], 0 }
   0x4   :  { %18 = vsyncpa [#allocation3 + $0x1], 0 }
   0x5   :  { %19 = vsyncpa [#allocation6], 0 }
   0x6   :  { %20 = vsyncpa [#allocation4], 0 }
   0x7   :  { %22 = vsyncpa [#allocation4 + $0x1], 0 }
   0x8   :  { %23 = vsyncpa [#allocation10], 0 }
   0x9   :  { %25 = vsyncpa [#allocation10 + $0x1], 0  ;;  %s4475_s13 = smov 0   ;;  %s4477_s14 = smov 0  }
   0xa   :  { %s4479_s15 = smov 0   ;;  %s4481_s16 = smov 0  }
   0xb LB: > { %5071 = sst [smem:[#allocation15_spill]] %s4405_s15  ;;  %s4496_s17 = sadd.s32 4294967295, %s4409_s16   ;;  %s4409_s16 = sphi %s4481_s16, %s5090_s16   ;;  %s4405_s15 = sphi %s4479_s15, %s5092_s15   ;;  %s4401_s14 = sphi %s4477_s14, %s5094_s14   ;;  %s4397_s13 = sphi %s4475_s13, %s5093_s13  }
   0xc   : > { %s3552_s18 = sadd.s32 4294967294, %s4409_s16   ;;  %p51_p0 = scmp.ne.s32.totalorder %s4401_s14, %s4397_s13 }
   0xd   : > { %p5061_p1 = scmp.eq.s32.totalorder %s4496_s17, 0  ;;  %p259_p3 = scmp.eq.s32.totalorder %s3552_s18, 2 }
   0xe   : > { %p3553_p5 = scmp.ge.s32.totalorder %s4409_s16, 1  ;;  %p292_p7 = scmp.lt.s32.totalorder %s4409_s16, 4 }
   0xf   : > { %p4505_p4 = por %p5061_p1, %p51_p0  ;;  %p4510_p6 = por %p259_p3, %p51_p0 }
  0x10   : > { %p4515_p8 = pnand %p3553_p5, %p292_p7  ;;  %s4411_s22 = smov [#allocation5]  }
  0x11   : > { %s5072_s19 = scalar_select %p4505_p4, 1, 0 }
  0x12   : > { %s5073_s20 = scalar_select %p4510_p6, 1, 0 }
  0x13   : > { %s5074_s21 = scalar_select %p4515_p8, 1, 0 }
  0x14   : > { %s307_s23 = sshll.u32 %s4411_s22, 4  ;;  %p4070_p9 = pneg %p4515_p8  ;;  %s308_s23 = int_to_ptr.vmem [resolvable:$true] %s307_s23 }
  0x15   : > { %s4412_s25 = smov [#allocation7]   ;;  %s4242_s27 = scalar_lea.vmem %s308_s23, 512 }
  0x16   : > { %p4523_p10 = pnand %p4070_p9, %p5061_p1  ;;  %s320_s26 = sshll.u32 %s4412_s25, 4  ;;  %s321_s26 = int_to_ptr.vmem [resolvable:$true] %s320_s26 }
  0x17   : > { %p4243_p12 = scmp.ne.s32.totalorder %s308_s23, %s4242_s27  ;;  %p4250_p3 = scmp.lt.s32.totalorder %s308_s23, %s308_s23 }
  0x18   : > { %p4233_p11 = pneg %p4523_p10  ;;  %p4251_p5 = scmp.lt.s32.totalorder %s4242_s27, %s4242_s27 }
  0x1a   : > { %p4245_p13 = pnand %p4243_p12, %p4233_p11  ;;  %p4252_p7 = por %p4251_p5, %p4250_p3 }
  0x1c   : > { %p4246_p0 = pneg %p4245_p13 }
  0x1e   : > { %p4253_p9 = pnand %p4252_p7, %p4246_p0 }
  0x20   : > { %4256 = shalt.err (!%p4253_p9)
}
  0x21   : > { %s4413_s28 = smov 128   ;;  %s4414_s29 = smov 8  }
  0x22   : > { %s5076_s3 = sld [smem:[#allocation18_spill]]  ;;  %s4268_s12 = scalar_lea.vmem %s321_s26, 3072 }
  0x23   : > { %p4269_p1 = scmp.ne.s32.totalorder %s321_s26, %s4268_s12  ;;  %p4276_p2 = scmp.lt.s32.totalorder %s321_s26, %s321_s26 }
  0x24   : > { %p4277_p6 = scmp.lt.s32.totalorder %s4268_s12, %s4268_s12 }
  0x25   : > { %p4271_p12 = pnand %p4269_p1, %p4233_p11 }
  0x26   : > { %p4278_p3 = por %p4277_p6, %p4276_p2 }
  0x27   : > { %p4272_p13 = pneg %p4271_p12 }
  0x28   : > { %4073 = dma.hbm_to_vmem [thread:$0]  (!%p4523_p10), %s5076_s3, 512, %s308_s23, [#allocation6], %s4413_s28, %s4413_s28, %s4414_s29  }
  0x29   : > { %p4279_p0 = pnand %p4278_p3, %p4272_p13 }
  0x2b   : > { %4282 = shalt.err (!%p4279_p0)
}
  0x2c   : > { %s5077_s4 = sld [smem:[#allocation19_spill]]  ;;  %s4546_s23 = sadd.s32 1, %s4409_s16  }
  0x2d   : > { %5078 = sst [smem:[#allocation16_spill]] %s4546_s23  ;;  %s38_s25 = sadd.s32 1, %s4405_s15 }
  0x2e   : > { %s35_s24 = ssub.s32 %s4409_s16, %s4546_s23  ;;  %p45_p1 = scmp.ne.s32.totalorder %s4405_s15, %s4401_s14 }
  0x2f   : > { %p36_p2 = scmp.eq.s32.totalorder %s35_s24, 0  ;;  %p46_p6 = scmp.eq.s32.totalorder %s4409_s16, 0 }
  0x30   : > { %p5079_p11 = scmp.eq.s32.totalorder %s4496_s17, 2  ;;  %p4090_p7 = scmp.lt.s32.totalorder %s4409_s16, 3 }
  0x31   : > { %s4562_s30 = scalar_select %p36_p2, %s4405_s15, %s38_s25  }
  0x32   : > { %4076 = dma.hbm_to_vmem [thread:$0]  (!%p4523_p10), %s5077_s4, 3072, %s321_s26, [#allocation6], %s4413_s28, %s4413_s28, %s4414_s29  }
  0x33   : > { %p4556_p5 = por %p5079_p11, %p45_p1  ;;  %5081 = sst [smem:[#allocation17_spill]] %s4562_s30 }
  0x34   : > { %p47_p9 = por %p46_p6, %p45_p1  ;;  %s343_s11 = sand.u32 1, %s4405_s15  }
  0x35   : > { %s5080_s27 = scalar_select %p4556_p5, 1, 0 }
  0x36   : > { %s3557_s12 = sshll.u32 %s343_s11, 3  ;;  %s3558_s26 = sshll.u32 %s4409_s16, 7 }
  0x37   : > { %s4569_s18 = scalar_lea.hbm %s5050_s0, %s3558_s26  ;;  %s347_s22 = scalar_lea.vmem [#allocation2], %s3557_s12 }
  0x38   : > { %s354_s24 = sshll.u32 %s347_s22, 4  ;;  %p4571_p10 = pnand %p4090_p7, %p47_p9  ;;  %s355_s24 = int_to_ptr.vmem [resolvable:$true] %s354_s24 }
  0x39   : > { %s344_s25 = scalar_lea.sflag [#allocation3], %s343_s11  ;;  %s4283_s4 = scalar_lea.hbm %s4569_s18, 128 }
  0x3a   : > { %p4284_p12 = scmp.ne.s32.totalorder %s4569_s18, %s4283_s4  ;;  %p4285_p13 = pneg %p4571_p10 }
  0x3b   : > { %s4288_s29 = scalar_lea.hbm %s5050_s0, 384  ;;  %p4289_p1 = scmp.lt.s32.totalorder %s4569_s18, %s5050_s0 }
  0x3c   : > { %p4286_p3 = pnand %p4285_p13, %p4284_p12  ;;  %p4290_p2 = scmp.lt.s32.totalorder %s4288_s29, %s4283_s4 }
  0x3e   : > { %p4287_p0 = pneg %p4286_p3  ;;  %p4291_p6 = por %p4290_p2, %p4289_p1 }
  0x40   : > { %p4292_p11 = pnand %p4291_p6, %p4287_p0 }
  0x42   : > { %4295 = shalt.err (!%p4292_p11)
}
  0x43   : > { %s4296_s22 = scalar_lea.vmem %s355_s24, 128  ;;  %s4415_s11 = smov [#allocation2]  }
  0x44   : > { %p4297_p7 = scmp.ne.s32.totalorder %s355_s24, %s4296_s22  ;;  %s4301_s15 = sshll.u32 %s4415_s11, 4  ;;  %s4302_s15 = int_to_ptr.vmem [resolvable:$false] %s4301_s15 }
  0x45   : > { %s4303_s23 = scalar_lea.vmem %s4302_s15, 256  ;;  %p4304_p12 = scmp.lt.s32.totalorder %s355_s24, %s4302_s15 }
  0x46   : > { %p4299_p9 = pnand %p4297_p7, %p4285_p13  ;;  %p4305_p3 = scmp.lt.s32.totalorder %s4303_s23, %s4296_s22 }
  0x48   : > { %p4300_p5 = pneg %p4299_p9  ;;  %p4306_p4 = por %p4305_p3, %p4304_p12 }
  0x4a   : > { %p4307_p8 = pnand %p4306_p4, %p4300_p5 }
  0x4c   : > { %4310 = shalt.err (!%p4307_p8)
}
  0x4d   : > { %4080 = dma.hbm_to_vmem [thread:$0]  (!%p4571_p10), %s4569_s18, 128, %s355_s24, %s344_s25  }
  0x4e   : > { %p5083_p0 = scmp.ne.s32.totalorder %s5074_s21, 0 }
  0x4f   : > { %s4592_s4 = sand.u32 (!%p5083_p0), 1, %s4401_s14   ;;  %p5084_p13 = scmp.ne.s32.totalorder (!%p5083_p0), %s5072_s19, 0 }
  0x50   : > { %369 = sbr.rel (%p5083_p0) target bundleno = 4317 (0x10dd), region = 52  ;;  %s3560_s30 = sshll.u32 (!%p5083_p0), %s4592_s4, 3 }
  0x51   : > { %s372_s26 = scalar_lea.sflag (!%p5083_p0), [#allocation3], %s4592_s4  ;;  %s375_s15 = scalar_lea.vmem (!%p5083_p0), [#allocation2], %s3560_s30 }
  0x55   : > { %4380 = dma.done.wait (%p5084_p13), %s372_s26, 128  }
  0x56   : > { %4382 = vsyncadd (%p5084_p13), %s372_s26, 4294967168  ;;  %p5085_p4 = scmp.eq.s32.totalorder %s4496_s17, 0 }
  0x58   : > { %4384 = dma.done.wait (%p5085_p4), [#allocation6], 3584   ;;  %p5086_p8 = pmov %p5085_p4 }
  0x59   : > { %v4416_v0 = vmov 0.0   ;;  %vm4417_vm0 = vmmov 0   ;;  %vm443_vm1 = vcmask 261120   ;;  %v4613_v1 = vld [vmem:[%s5052_s2 + $0x8] sm:$0xff]  ;;  %v4620_v2 = vld [vmem:[%s5052_s2 + $0x18] sm:$0xff]  ;;  %v4626_v3 = vld [vmem:[%s5052_s2] sm:$0xff]  ;;  %v805_v46 = vlaneseq }
  0x5a   : > { %4386 = vsyncadd (%p5086_p8), [#allocation6], 4294963712  ;;  %3807 = vmatprep.subr.mxu0 %v4416_v0  ;;  %3811 = vmatprep.mubr.msk.f32.mxu0 %vm4417_vm0, %v4416_v0  ;;  %v437_v4 = vld [vmem:[%s375_s15] sm:$0xff]  ;;  %v4636_v5 = vld [vmem:[%s5052_s2 + $0x10] sm:$0xff]  ;;  %vm771_vm4 = vcmask 64512   ;;  %p430_p5 = scmp.lt.s32.totalorder %s4496_s17, 2 }
  0x5b   : > { %3814 = vmatprep.subr.mxu1 %v4416_v0  ;;  %3818 = vmatprep.mubr.msk.f32.mxu1 %vm4417_vm0, %v4416_v0  ;;  %v4678_v49 = vshrl.u32 %v805_v46, 7  ;;  %vm1022_vm9 = vcmask 130048   ;;  %vm1229_vm10 = vcmask 253952   ;;  %s423_s30 = scalar_lea.vmem [#allocation8], %s4592_s4  ;;  %vm1234_vm11 = vcmask 57344   ;;  %s3665_s26 = sshll.u32 %s4496_s17, 4 }
  0x5c   : > { %3808 = vmatpush3.xpose.msk.msra.mxu0 %vm443_vm1, %v4613_v1  ;;  %3815 = vmatpush3.xpose.msk.msra.mxu1 %vm443_vm1, %v4620_v2  ;;  %s4666_s29 = scalar_select %p430_p5, %s4496_s17, 2  ;;  %vm3359_vm12 = vcmask 1041409   ;;  %vm3362_vm13 = vcmask 123904  }
  0x5d   : > { %3809 = vmatprep.subr.mxu0 %v4416_v0  ;;  %3816 = vmatprep.subr.mxu1 %v4416_v0  ;;  %v807_v51 = vsub.s32 0, %v4678_v49  ;;  %s3393_s15 = sshll.u32 %s423_s30, 4  ;;  %s3391_s21 = scalar_lea.hbm %s5059_s9, %s3665_s26  ;;  %s3394_s15 = int_to_ptr.vmem [resolvable:$true] %s3393_s15 }
  0x5e   : > { %s4672_s11 = scalar_lea.vmem %s5051_s1, %s4666_s29  ;;  %s3374_s23 = scalar_lea.sflag [#allocation4], %s4592_s4 }
  0x5f   : > { %v4675_v47 = vld [vmem:[%s4672_s11] sm:$0x1]  ;;  %s4311_s18 = scalar_lea.vmem %s3394_s15, 16  ;;  %p5087_p1 = scmp.ne.s32.totalorder %s5080_s27, 0 }
  0x60   : > { %3810 = vmatpush3.xpose.msk.msra.mxu0 %vm443_vm1, %v4626_v3  ;;  %3817 = vmatpush3.xpose.msk.msra.mxu1 %vm443_vm1, %v4636_v5  ;;  %v3576_v48 = vadd.f32 -1.0, %v4675_v47  ;;  %p4312_p10 = scmp.ne.s32.totalorder %s3394_s15, %s4311_s18  ;;  %s4418_s24 = smov [#allocation8]  }
  0x61   : > { %3821 = vmatprep.subr.msk.mxu0 %vm443_vm1, %v437_v4  ;;  %3836 = vmatprep.subr.mxu1 %v437_v4  ;;  %s4315_s25 = sshll.u32 %s4418_s24, 4  ;;  %s4316_s25 = int_to_ptr.vmem [resolvable:$false] %s4315_s25 }
  0x62   : > { %v803_v50 = vmul.f32 1e+09, %v3576_v48  ;;  %p4313_p2 = pnand %p4312_p10, %p5087_p1  ;;  %s4317_s28 = scalar_lea.vmem %s4316_s25, 32 }
  0x63   : > { %3812 = vmatmul.mubr.msk.f32.vlgmr.msra.gmra.mxu0 %vm443_vm1, %v437_v4  ;;  %3819 = vmatmul.mubr.msk.f32.vlgmr.msra.gmra.mxu1 %vm443_vm1, %v437_v4  ;;  %p4318_p11 = scmp.lt.s32.totalorder %s3394_s15, %s4316_s25  ;;  %p4319_p7 = scmp.lt.s32.totalorder %s4317_s28, %s4311_s18 }
  0x64   : > { %3822 = vmatpush3.xpose.msk.msra.mxu0 %vm443_vm1, %v437_v4  ;;  %3823 = vmatprep.mubr.msk.f32.mxu0 %vm443_vm1, %v4626_v3  ;;  %v808_v54 = vrot.slane %v803_v50, %v807_v51  ;;  %p4314_p6 = pneg %p4313_p2 }
  0x65   : > { %3826 = vmatprep.subr.msk.mxu0 %vm443_vm1, %v437_v4  ;;  %3837 = vmatpush3.msra.mxu1 %v437_v4  ;;  %p4320_p9 = por %p4319_p7, %p4318_p11 }
  0x66   : > { %3848 = vmatprep.subr.mxu1 %v4416_v0 }
  0x67   : > { %3824 = vmatmul.mubr.msk.f32.vlgmr.msra.gmra.mxu0 %vm443_vm1, %v4613_v1  ;;  %p4321_p12 = pnand %p4320_p9, %p4314_p6 }
  0x68   : > { %3827 = vmatpush3.xpose.msk.msra.mxu0 %vm443_vm1, %v437_v4  ;;  %3828 = vmatprep.mubr.msk.f32.mxu0 %vm443_vm1, %v4636_v5 }
  0x69   : > { %3831 = vmatprep.subr.mxu0 %v437_v4 }
  0x6b   : > { %3829 = vmatmul.mubr.msk.f32.vlgmr.msra.gmra.mxu0 %vm443_vm1, %v4620_v2 }
  0x6c   : > { %3832 = vmatpush3.msra.mxu0 %v437_v4 }
  0x6d   : > { %3841 = vmatprep.subr.mxu0 %v4416_v0 }
 0x123   : > { %v4656_v6 = vpop.f32.mrf.mxu0  ;;  %v4658_v8 = vpop.f32.mrf.mxu1 }
 0x124   : > { %vm750_vm7 = vcmp.ge.f32.partialorder %v4658_v8, 0.0  ;;  %vm749_vm8 = vcmp.ge.f32.partialorder %v4656_v6, 0.0 }
 0x125   : > { %v3813_v7 = vpop.f32.mrf.mxu0  ;;  %v3820_v10 = vpop.f32.mrf.mxu1 }
 0x127   : > { %v3825_v9 = vpop.f32.mrf.mxu0 }
 0x128   : > { %vm756_vm2 = vcmp.ge.f32.partialorder %v3825_v9, 0.0  ;;  %v760_v11 = vmul.f32 0.1, %v3825_v9 }
 0x129   : > { %v665_v12 = vpop.f32.mrf.mxu0 }
 0x12a   : > { %v764_v13 = vsel %vm756_vm2, %v3825_v9, %v760_v11  ;;  %vm755_vm3 = vcmp.ge.f32.partialorder %v665_v12, 0.0  ;;  %v759_v14 = vmul.f32 0.1, %v665_v12 }
 0x12b   : > { %v768_v15 = vmul.f32 %v764_v13, %v764_v13  ;;  %v3830_v16 = vpop.f32.mrf.mxu0 }
 0x12c   : > { %v763_v17 = vsel %vm755_vm3, %v665_v12, %v759_v14  ;;  %vm758_vm5 = vcmp.ge.f32.partialorder %v3830_v16, 0.0  ;;  %v762_v18 = vmul.f32 0.1, %v3830_v16  ;;  %v752_v14 = vmul.f32 0.1, %v4658_v8 }
 0x12d   : > { %v767_v19 = vmul.f32 %v763_v17, %v763_v17  ;;  %v740_v20 = vpop.f32.mrf.mxu0  ;;  %v773_v23 = vsel %vm771_vm4, %v768_v15, 0.0 }
 0x12e   : > { %v766_v21 = vsel %vm758_vm5, %v3830_v16, %v762_v18  ;;  %vm757_vm6 = vcmp.ge.f32.partialorder %v740_v20, 0.0  ;;  %v761_v22 = vmul.f32 0.1, %v740_v20  ;;  %v754_v15 = vsel %vm750_vm7, %v4658_v8, %v752_v14 }
 0x12f   : > { %v772_v24 = vsel %vm771_vm4, %v767_v19, 0.0  ;;  %v770_v25 = vmul.f32 %v766_v21, %v766_v21  ;;  %v751_v16 = vmul.f32 0.1, %v4656_v6 }
 0x130   : > { %v774_v26 = vadd.f32 %v773_v23, %v772_v24  ;;  %v765_v27 = vsel %vm757_vm6, %v740_v20, %v761_v22 }
 0x131   : > { %v769_v28 = vmul.f32 %v765_v27, %v765_v27  ;;  %v782_v30 = vsel %vm771_vm4, %v770_v25, 0.0  ;;  %v753_v18 = vsel %vm749_vm8, %v4656_v6, %v751_v16 }
 0x132   : > { %v775_v29 = vrot.slane %v774_v26, 4  ;;  %v1020_v20 = vmul.f32 %v753_v18, %v753_v18 }
 0x133   : > { %v781_v31 = vsel %vm771_vm4, %v769_v28, 0.0 }
 0x134   : > { %v776_v32 = vadd.f32 %v775_v29, %v774_v26  ;;  %v783_v33 = vadd.f32 %v782_v30, %v781_v31  ;;  %v1023_v22 = vsel %vm1022_vm9, %v1020_v20, 0.0 }
 0x135   : > { %v1024_v24 = vrot.slane %v1023_v22, 4 }
 0x136   : > { %v777_v34 = vrot.slane %v776_v32, 2  ;;  %v784_v35 = vrot.slane %v783_v33, 4 }
 0x137   : > { %v1025_v26 = vadd.f32 %v1024_v24, %v1023_v22 }
 0x138   : > { %v778_v36 = vadd.f32 %v777_v34, %v776_v32  ;;  %v785_v37 = vadd.f32 %v784_v35, %v783_v33 }
 0x139   : > { %v1026_v8 = vrot.slane %v1025_v26, 2 }
 0x13a   : > { %v779_v38 = vrot.slane %v778_v36, 1  ;;  %v786_v39 = vrot.slane %v785_v37, 2 }
 0x13b   : > { %v1027_v29 = vadd.f32 %v1026_v8, %v1025_v26 }
 0x13c   : > { %v780_v40 = vadd.f32 %v779_v38, %v778_v36  ;;  %v787_v41 = vadd.f32 %v786_v39, %v785_v37 }
 0x13d   : > { %v1028_v31 = vrot.slane %v1027_v29, 1 }
 0x13e   : > { %v790_v42 = vadd.f32 1e-16, %v780_v40  ;;  %v788_v43 = vrot.slane %v787_v41, 1 }
 0x13f   : > { %v1029_v33 = vadd.f32 %v1028_v31, %v1027_v29  ;;  %v1326_v29 = vld [vmem:[#allocation5 + $0x18] sm:$0xff] }
 0x140   : > { %4132 = vrsqrt.f32 %v790_v42  ;;  %v789_v44 = vadd.f32 %v788_v43, %v787_v41 }
 0x141   : > { %v1037_v36 = vadd.f32 1e-16, %v1029_v33 }
 0x142   : > { %v791_v45 = vadd.f32 1e-16, %v789_v44 }
 0x144   : > { %4134 = vrsqrt.f32 %v791_v45 }
 0x14d   : > { %v4133_v52 = vpop.eup %4132 }
 0x14e   : > { %v794_v53 = vmul.f32 %v4133_v52, %v763_v17  ;;  %v795_v55 = vmul.f32 %v4133_v52, %v764_v13  ;;  %v1021_v17 = vmul.f32 %v754_v15, %v754_v15 }
 0x150   : > { %v798_v56 = vmul.f32 10.0, %v794_v53  ;;  %v799_v57 = vmul.f32 10.0, %v795_v55  ;;  %v1030_v19 = vsel %vm1022_vm9, %v1021_v17, 0.0 }
 0x151   : > { %v4135_v58 = vpop.eup %4134 }
 0x152   : > { %v810_v59 = vadd.f32 %v808_v54, %v798_v56  ;;  %v796_v60 = vmul.f32 %v4135_v58, %v765_v27  ;;  %v797_v61 = vmul.f32 %v4135_v58, %v766_v21  ;;  %v811_v63 = vadd.f32 %v808_v54, %v799_v57 }
 0x153   : > { %v1031_v21 = vrot.slane %v1030_v19, 4 }
 0x154   : > { %v814_v62 = vsel %vm771_vm4, %v810_v59, -inf  ;;  %v800_v4 = vmul.f32 10.0, %v796_v60  ;;  %v801_v7 = vmul.f32 10.0, %v797_v61  ;;  %v817_v10 = vsel %vm771_vm4, %v811_v63, -inf }
 0x155   : > { %815 = vmax.xlane.f32.xlu0 %v814_v62  ;;  %v1032_v23 = vadd.f32 %v1031_v21, %v1030_v19 }
 0x156   : > { %v812_v9 = vadd.f32 %v808_v54, %v800_v4  ;;  %v813_v12 = vadd.f32 %v808_v54, %v801_v7 }
 0x157   : > { %v1033_v25 = vrot.slane %v1032_v23, 2 }
 0x158   : > { %v820_v11 = vsel %vm771_vm4, %v812_v9, -inf  ;;  %v823_v13 = vsel %vm771_vm4, %v813_v12, -inf }
 0x159   : > { %818 = vmax.xlane.f32.xlu0 %v817_v10  ;;  %821 = vmax.xlane.f32.xlu1 %v820_v11  ;;  %v1034_v27 = vadd.f32 %v1033_v25, %v1032_v23 }
 0x15b   : > { %v1035_v28 = vrot.slane %v1034_v27, 1 }
 0x15d   : > { %824 = vmax.xlane.f32.xlu1 %v823_v13  ;;  %v1036_v30 = vadd.f32 %v1035_v28, %v1034_v27 }
 0x15f   : > { %v1038_v32 = vadd.f32 1e-16, %v1036_v30 }
 0x161   : > { %4136 = vrsqrt.f32 %v1038_v32 }
 0x16e   : > { %v4137_v46 = vpop.eup %4136 }
 0x16f   : > { %v1042_v50 = vmul.f32 %v4137_v46, %v754_v15 }
 0x171   : > { %v1044_v55 = vmul.f32 10.0, %v1042_v50 }
 0x173   : > { %v1048_v61 = vsel %vm1022_vm9, %v1044_v55, -inf }
 0x1de   : > { %v816_v6 = vpop.xlane.xlu0 %815 }
 0x1df   : > { %v826_v34 = vsub.f32 %v810_v59, %v816_v6  ;;  %v1325_v6 = vld [vmem:[#allocation5 + $0x10] sm:$0xff] }
 0x1e1   : > { %v830_v35 = vmul.f32 1.442695, %v826_v34 }
 0x1e2   : > { %v819_v37 = vpop.xlane.xlu0 %818  ;;  %v822_v38 = vpop.xlane.xlu1 %821 }
 0x1e3   : > { %4138 = vpow2.f32 %v830_v35  ;;  %v827_v39 = vsub.f32 %v811_v63, %v819_v37  ;;  %v828_v40 = vsub.f32 %v812_v9, %v822_v38  ;;  %v1324_v35 = vld [vmem:[#allocation5 + $0x8] sm:$0xff]  ;;  %v1323_v37 = vld [vmem:[#allocation5] sm:$0xff] }
 0x1e4   : > { %4140 = vrsqrt.f32 %v1037_v36 }
 0x1e5   : > { %v832_v41 = vmul.f32 1.442695, %v827_v39  ;;  %v834_v42 = vmul.f32 1.442695, %v828_v40 }
 0x1e6   : > { %v825_v43 = vpop.xlane.xlu1 %824 }
 0x1e7   : > { %4142 = vpow2.f32 %v832_v41  ;;  %v829_v44 = vsub.f32 %v813_v12, %v825_v43 }
 0x1e8   : > { %4144 = vpow2.f32 %v834_v42 }
 0x1e9   : > { %v836_v45 = vmul.f32 1.442695, %v829_v44 }
 0x1eb   : > { %4146 = vpow2.f32 %v836_v45 }
 0x1f0   : > { %v4139_v48 = vpop.eup %4138 }
 0x1f1   : > { %v838_v52 = vsel %vm771_vm4, %v4139_v48, 0.0  ;;  %v4141_v53 = vpop.eup %4140 }
 0x1f2   : > { %839 = vadd.xlane.f32.xlu0 %v838_v52  ;;  %v1041_v59 = vmul.f32 %v4141_v53, %v753_v18 }
 0x1f4   : > { %v4143_v54 = vpop.eup %4142  ;;  %v1043_v63 = vmul.f32 10.0, %v1041_v59 }
 0x1f5   : > { %v4145_v56 = vpop.eup %4144  ;;  %v841_v57 = vsel %vm771_vm4, %v4143_v54, 0.0 }
 0x1f6   : > { %842 = vadd.xlane.f32.xlu1 %v841_v57  ;;  %v844_v58 = vsel %vm771_vm4, %v4145_v56, 0.0  ;;  %v1045_v4 = vsel %vm1022_vm9, %v1043_v63, -inf }
 0x1f7   : > { %845 = vadd.xlane.f32.xlu0 %v844_v58 }
 0x1f8   : > { %v4147_v60 = vpop.eup %4146 }
 0x1f9   : > { %v847_v62 = vsel %vm771_vm4, %v4147_v60, 0.0 }
 0x1fa   : > { %848 = vadd.xlane.f32.xlu1 %v847_v62 }
 0x1fb   : > { %1049 = vmax.xlane.f32.xlu0 %v1048_v61 }
 0x1ff   : > { %1046 = vmax.xlane.f32.xlu0 %v1045_v4 }
 0x27b   : > { %v840_v7 = vpop.xlane.xlu0 %839 }
 0x27c   : > { %4148 = vrcp.f32 %v840_v7 }
 0x27f   : > { %v843_v9 = vpop.xlane.xlu1 %842 }
 0x280   : > { %v846_v10 = vpop.xlane.xlu0 %845  ;;  %4150 = vrcp.f32 %v843_v9 }
 0x281   : > { %4152 = vrcp.f32 %v846_v10 }
 0x283   : > { %v849_v11 = vpop.xlane.xlu1 %848 }
 0x284   : > { %v1050_v12 = vpop.xlane.xlu0 %1049  ;;  %4154 = vrcp.f32 %v849_v11 }
 0x285   : > { %v1052_v13 = vsub.f32 %v1044_v55, %v1050_v12 }
 0x287   : > { %v1055_v14 = vmul.f32 1.442695, %v1052_v13 }
 0x288   : > { %v1047_v15 = vpop.xlane.xlu0 %1046 }
 0x289   : > { %v4149_v16 = vpop.eup %4148  ;;  %4156 = vpow2.f32 %v1055_v14  ;;  %v1051_v17 = vsub.f32 %v1043_v63, %v1047_v15  ;;  %v3584_v14 = vld [vmem:[%s5055_s5] ss:$0 sm:$0xff] }
 0x28a   : > { %v854_v18 = vmul.f32 %v4149_v16, %v4139_v48 }
 0x28b   : > { %v1053_v19 = vmul.f32 1.442695, %v1051_v17 }
 0x28c   : > { %3833 = vmatprep.mubr.msk.f32.mxu0 %vm771_vm4, %v854_v18 }
 0x28d   : > { %v4151_v20 = vpop.eup %4150  ;;  %4158 = vpow2.f32 %v1053_v19 }
 0x28e   : > { %v4153_v21 = vpop.eup %4152  ;;  %v855_v22 = vmul.f32 %v4151_v20, %v4143_v54 }
 0x28f   : > { %v856_v23 = vmul.f32 %v4153_v21, %v4145_v56 }
 0x290   : > { %3834 = vmatmul.mubr.msk.f32.vlgmr.msra.gmra.mxu0 %vm771_vm4, %v855_v22 }
 0x291   : > { %v4155_v24 = vpop.eup %4154  ;;  %3838 = vmatprep.mubr.msk.f32.mxu1 %vm771_vm4, %v856_v23  ;;  %3842 = vmatpush3.msra.mxu0 %v4613_v1 }
 0x292   : > { %v857_v25 = vmul.f32 %v4155_v24, %v4147_v60  ;;  %3843 = vmatprep.subr.mxu0 %v4416_v0  ;;  %3845 = vmatprep.mubr.msk.f32.mxu0 %vm4417_vm0, %v4416_v0 }
 0x293   : > { %3844 = vmatpush3.msra.mxu0 %v4626_v3 }
 0x294   : > { %3839 = vmatmul.mubr.msk.f32.vlgmr.msra.gmra.mxu1 %vm771_vm4, %v857_v25  ;;  %3855 = vmatprep.subr.mxu0 %v4416_v0 }
 0x295   : > { %3849 = vmatpush3.msra.mxu1 %v4620_v2  ;;  %3852 = vmatprep.mubr.msk.f32.mxu1 %vm4417_vm0, %v4416_v0 }
 0x296   : > { %v4157_v26 = vpop.eup %4156  ;;  %3850 = vmatprep.subr.mxu1 %v4416_v0 }
 0x297   : > { %v1060_v27 = vsel %vm1022_vm9, %v4157_v26, 0.0  ;;  %3851 = vmatpush3.msra.mxu1 %v4636_v5 }
 0x298   : > { %1061 = vadd.xlane.f32.xlu1 %v1060_v27  ;;  %3860 = vmatprep.subr.mxu1 %v1326_v29 }
 0x29a   : > { %v4159_v8 = vpop.eup %4158 }
 0x29b   : > { %v1057_v28 = vsel %vm1022_vm9, %v4159_v8, 0.0 }
 0x29c   : > { %1058 = vadd.xlane.f32.xlu1 %v1057_v28 }
 0x321   : > { %v1062_v30 = vpop.xlane.xlu1 %1061 }
 0x322   : > { %4160 = vrcp.f32 %v1062_v30  ;;  %v1572_v30 = vld [vmem:[#allocation7 + $0x78] sm:$0xff] }
 0x325   : > { %v1059_v31 = vpop.xlane.xlu1 %1058 }
 0x326   : > { %4162 = vrcp.f32 %v1059_v31  ;;  %v1461_v31 = vld [vmem:[#allocation7 + $0x10] sm:$0xff] }
 0x32f   : > { %v4161_v32 = vpop.eup %4160 }
 0x330   : > { %v1066_v33 = vmul.f32 %v4161_v32, %v4157_v26  ;;  %v1571_v32 = vld [vmem:[#allocation7 + $0x70] sm:$0xff] }
 0x332   : > { %3853 = vmatmul.mubr.msk.f32.vlgmr.msra.gmra.mxu1 %vm1022_vm9, %v1066_v33  ;;  %v1460_v33 = vld [vmem:[#allocation7 + $0x8] sm:$0xff] }
 0x333   : > { %v4163_v34 = vpop.eup %4162  ;;  %3861 = vmatpush3.msra.mxu1 %v1326_v29  ;;  %v1462_v29 = vld [vmem:[#allocation7 + $0x18] sm:$0xff] }
 0x334   : > { %v1065_v36 = vmul.f32 %v4163_v34, %v4159_v8  ;;  %3862 = vmatprep.subr.mxu1 %v1325_v6  ;;  %v1459_v34 = vld [vmem:[#allocation7] sm:$0xff] }
 0x335   : > { %3863 = vmatpush3.msra.mxu1 %v1325_v6  ;;  %v1570_v6 = vld [vmem:[#allocation7 + $0x68] sm:$0xff] }
 0x336   : > { %3846 = vmatmul.mubr.msk.f32.vlgmr.msra.gmra.mxu0 %vm1022_vm9, %v1065_v36  ;;  %3864 = vmatprep.subr.mxu1 %v1324_v35 }
 0x337   : > { %3865 = vmatpush3.msra.mxu1 %v1324_v35  ;;  %3857 = vmatprep.mubr.msk.f32.mxu0 %vm4417_vm0, %v4416_v0  ;;  %v1569_v35 = vld [vmem:[#allocation7 + $0x60] sm:$0xff] }
 0x338   : > { %3866 = vmatprep.subr.mxu1 %v1323_v37 }
 0x339   : > { %3867 = vmatpush3.msra.mxu1 %v1323_v37 }
 0x33a   : > { %3888 = vmatprep.subr.mxu1 %v1572_v30 }
 0x350   : > { %v3835_v38 = vpop.f32.mrf.mxu0 }
 0x351   : > { %v1316_v39 = vsub.f32 %v3835_v38, %v4613_v1  ;;  %v1216_v43 = vsel %vm443_vm1, %v3835_v38, 0.0 }
 0x352   : > { %v930_v40 = vpop.f32.mrf.mxu0 }
 0x353   : > { %v1315_v41 = vsub.f32 %v930_v40, %v4626_v3  ;;  %v1320_v46 = vmul.f32 %v1316_v39, %v1316_v39  ;;  %v1213_v0 = vsel %vm443_vm1, %v930_v40, 0.0 }
 0x354   : > { %v3840_v42 = vpop.f32.mrf.mxu1 }
 0x355   : > { %v1319_v44 = vmul.f32 %v1315_v41, %v1315_v41  ;;  %v1217_v45 = vsel %vm443_vm1, %v3840_v42, 0.0  ;;  %v1318_v50 = vsub.f32 %v3840_v42, %v4620_v2 }
 0x356   : > { %v1218_v48 = vadd.f32 %v1217_v45, %v1216_v43  ;;  %v1011_v52 = vpop.f32.mrf.mxu1 }
 0x357   : > { %v1214_v53 = vsel %vm443_vm1, %v1011_v52, 0.0  ;;  %v1317_v1 = vsub.f32 %v1011_v52, %v4636_v5  ;;  %3868 = vmatprep.mubr.msk.f32.mxu1 %vm443_vm1, %v1319_v44  ;;  %v1322_v56 = vmul.f32 %v1318_v50, %v1318_v50 }
 0x358   : > { %v1215_v3 = vadd.f32 %v1214_v53, %v1213_v0  ;;  %3869 = vmatmul.mubr.msk.f32.vlgmr.msra.gmra.mxu1 %vm443_vm1, %v1320_v46  ;;  %v1220_v55 = vsel %vm443_vm1, %v1218_v48, 0.0 }
 0x359   : > { %v1321_v54 = vmul.f32 %v1317_v1, %v1317_v1  ;;  %3889 = vmatpush3.msra.mxu1 %v1572_v30 }
 0x35a   : > { %v1219_v2 = vsel %vm443_vm1, %v1215_v3, 0.0  ;;  %3890 = vmatprep.subr.mxu1 %v1571_v32 }
 0x35b   : > { %v1221_v57 = vadd.f32 %v1220_v55, %v1219_v2  ;;  %3871 = vmatprep.mubr.msk.f32.mxu1 %vm443_vm1, %v1321_v54  ;;  %3891 = vmatpush3.msra.mxu1 %v1571_v32  ;;  %v3596_v54 = vld [vmem:[%s5055_s5 + $0x4] ss:$0 sm:$0xff] }
 0x35c   : > { %3872 = vmatmul.mubr.msk.f32.gmra.mxu1 %vm443_vm1, %v1322_v56  ;;  %3892 = vmatprep.subr.mxu1 %v1570_v6 }
 0x35d   : > { %v1222_v58 = vrot.slane %v1221_v57, 4  ;;  %3893 = vmatpush3.msra.mxu1 %v1570_v6 }
 0x35e   : > { %3894 = vmatprep.subr.mxu1 %v1569_v35 }
 0x35f   : > { %v1223_v5 = vadd.f32 %v1222_v58, %v1221_v57  ;;  %3895 = vmatpush3.msra.mxu1 %v1569_v35  ;;  %v3590_v57 = vld [vmem:[%s5055_s5 + $0x1] ss:$0 sm:$0xff] }
 0x361   : > { %v1224_v59 = vrot.slane %v1223_v5, 2 }
 0x363   : > { %v1225_v60 = vadd.f32 %v1224_v59, %v1223_v5 }
 0x365   : > { %v1226_v61 = vrot.slane %v1225_v60, 1 }
 0x367   : > { %v1227_v62 = vadd.f32 %v1226_v61, %v1225_v60 }
 0x369   : > { %v1228_v63 = vmul.f32 0.03125, %v1227_v62 }
 0x36b   : > { %1230 = vst.msk [vmem:[%s423_s30] sm:$0x1] %vm1229_vm10, %v1228_v63 }
 0x3f2   : > { %v1209_v4 = vpop.f32.mrf.mxu1 }
 0x3f3   : > { %v1232_v10 = vsel %vm443_vm1, %v1209_v4, 0.0 }
 0x3f4   : > { %v3854_v7 = vpop.f32.mrf.mxu1 }
 0x3f6   : > { %v1136_v9 = vpop.f32.mrf.mxu0 }
 0x3f7   : > { %v1231_v11 = vsel %vm443_vm1, %v1136_v9, 0.0 }
 0x3f8   : > { %v1233_v12 = vadd.f32 %v1232_v10, %v1231_v11  ;;  %v3847_v13 = vpop.f32.mrf.mxu0 }
 0x3fa   : > { %3856 = vmatpush3.msra.mxu0 %v1233_v12 }
 0x3fb   : > { %3858 = vmatmul.mubr.msk.f32.vlgmr.msra.gmra.mxu0 %vm771_vm4, %v4675_v47  ;;  %3874 = vmatprep.subr.mxu0 %v1462_v29 }
 0x3fc   : > { %3875 = vmatpush3.msra.mxu0 %v1462_v29 }
 0x3fd   : > { %3876 = vmatprep.subr.mxu0 %v1461_v31 }
 0x3fe   : > { %3877 = vmatpush3.msra.mxu0 %v1461_v31 }
 0x3ff   : > { %3878 = vmatprep.subr.mxu0 %v1460_v33 }
 0x400   : > { %3879 = vmatpush3.msra.mxu0 %v1460_v33 }
 0x401   : > { %3880 = vmatprep.subr.mxu0 %v1459_v34 }
 0x402   : > { %3881 = vmatpush3.msra.mxu0 %v1459_v34 }
 0x418   : > { %v3870_v15 = vpop.f32.mrf.mxu1 }
 0x419   : > { %v1418_v16 = vadd.f32 %v3870_v15, %v3584_v14 }
 0x41a   : > { %v1412_v17 = vpop.f32.mrf.mxu1 }
 0x41b   : > { %v1413_v18 = vadd.f32 %v3584_v14, %v1412_v17  ;;  %v1432_v19 = vmul.f32 %v1418_v16, %v1418_v16 }
 0x41c   : > { %v3873_v20 = vpop.f32.mrf.mxu1 }
 0x41d   : > { %v4747_v21 = vadd.f32 %v3873_v20, %v3584_v14  ;;  %v1438_v22 = vsel %vm443_vm1, %v1432_v19, 0.0  ;;  %v1431_v23 = vmul.f32 %v1413_v18, %v1413_v18 }
 0x41e   : > { %1439 = vadd.xlane.f32.xlu1 %v1438_v22  ;;  %v1422_v24 = vpop.f32.mrf.mxu1 }
 0x41f   : > { %v1423_v25 = vadd.f32 %v3584_v14, %v1422_v24  ;;  %v1435_v47 = vsel %vm443_vm1, %v1431_v23, 0.0  ;;  %v1434_v26 = vmul.f32 %v4747_v21, %v4747_v21 }
 0x420   : > { %1436 = vadd.xlane.f32.xlu0 %v1435_v47 }
 0x421   : > { %v1444_v27 = vsel %vm443_vm1, %v1434_v26, 0.0  ;;  %v1433_v8 = vmul.f32 %v1423_v25, %v1423_v25 }
 0x422   : > { %1445 = vadd.xlane.f32.xlu1 %v1444_v27 }
 0x423   : > { %v1441_v28 = vsel %vm443_vm1, %v1433_v8, 0.0 }
 0x424   : > { %1442 = vadd.xlane.f32.xlu0 %v1441_v28 }
 0x4a7   : > { %v1440_v36 = vpop.xlane.xlu1 %1439 }
 0x4a8   : > { %v1448_v37 = vadd.f32 1e-16, %v1440_v36 }
 0x4a9   : > { %v1437_v38 = vpop.xlane.xlu0 %1436 }
 0x4aa   : > { %v1447_v39 = vadd.f32 1e-16, %v1437_v38  ;;  %4164 = vrsqrt.f32 %v1448_v37  ;;  %v2050_v38 = vld [vmem:[#allocation7 + $0x38] sm:$0xff] }
 0x4ab   : > { %v1446_v40 = vpop.xlane.xlu1 %1445 }
 0x4ac   : > { %4166 = vrsqrt.f32 %v1447_v39  ;;  %v1450_v41 = vadd.f32 1e-16, %v1446_v40 }
 0x4ad   : > { %v1443_v42 = vpop.xlane.xlu0 %1442 }
 0x4ae   : > { %v1449_v43 = vadd.f32 1e-16, %v1443_v42  ;;  %4168 = vrsqrt.f32 %v1450_v41 }
 0x4b0   : > { %4170 = vrsqrt.f32 %v1449_v43 }
 0x4b7   : > { %v4165_v44 = vpop.eup %4164 }
 0x4b8   : > { %v4757_v48 = vmul.f32 %v4165_v44, %v1418_v16 }
 0x4b9   : > { %v4167_v45 = vpop.eup %4166 }
 0x4ba   : > { %v4755_v46 = vmul.f32 %v4167_v45, %v1413_v18 }
 0x4bb   : > { %v4759_v50 = vpop.f32.mrf.mxu0  ;;  %v4169_v52 = vpop.eup %4168 }
 0x4bc   : > { %3882 = vmatprep.mubr.msk.f32.mxu0 %vm443_vm1, %v4755_v46  ;;  %3896 = vmatprep.mubr.msk.f32.mxu1 %vm443_vm1, %v4755_v46  ;;  %v4772_v3 = vmul.f32 %v4169_v52, %v4747_v21 }
 0x4bd   : > { %v4171_v0 = vpop.eup %4170  ;;  %3883 = vmatmul.mubr.msk.f32.vlgmr.msra.gmra.mxu0 %vm443_vm1, %v4757_v48  ;;  %3897 = vmatmul.mubr.msk.f32.vlgmr.msra.gmra.mxu1 %vm443_vm1, %v4757_v48  ;;  %v3859_v53 = vpop.f32.mrf.mxu0 }
 0x4be   : > { %v4769_v1 = vmul.f32 %v4171_v0, %v1423_v25 }
 0x4c0   : > { %3885 = vmatprep.mubr.msk.f32.mxu0 %vm443_vm1, %v4769_v1  ;;  %3899 = vmatprep.mubr.msk.f32.mxu1 %vm443_vm1, %v4769_v1 }
 0x4c1   : > { %3886 = vmatmul.mubr.msk.f32.gmra.mxu0 %vm443_vm1, %v4772_v3  ;;  %3900 = vmatmul.mubr.msk.f32.gmra.mxu1 %vm443_vm1, %v4772_v3 }
 0x57d   : > { %v3884_v55 = vpop.f32.mrf.mxu0  ;;  %v3898_v56 = vpop.f32.mrf.mxu1 }
 0x57e   : > { %v1653_v2 = vadd.f32 %v3898_v56, %v3596_v54  ;;  %v1555_v11 = vadd.f32 %v3884_v55, %v3590_v57  ;;  %v2160_v55 = vld [vmem:[#allocation7 + $0x98] sm:$0xff] }
 0x57f   : > { %v1549_v58 = vpop.f32.mrf.mxu0  ;;  %v1647_v5 = vpop.f32.mrf.mxu1 }
 0x580   : > { %v1550_v59 = vadd.f32 %v3590_v57, %v1549_v58  ;;  %v1648_v60 = vadd.f32 %v3596_v54, %v1647_v5  ;;  %3902 = vmatprep.subr.msk.mxu0 %vm443_vm1, %v1653_v2  ;;  %v2048_v58 = vld [vmem:[#allocation7 + $0x28] sm:$0xff] }
 0x581   : > { %v3887_v61 = vpop.f32.mrf.mxu0  ;;  %v3901_v62 = vpop.f32.mrf.mxu1  ;;  %3903 = vmatpush3.xpose.msk.msra.mxu0 %vm443_vm1, %v1653_v2  ;;  %v2049_v2 = vld [vmem:[#allocation7 + $0x30] sm:$0xff]  ;;  %v2158_v5 = vld [vmem:[#allocation7 + $0x88] sm:$0xff] }
 0x582   : > { %v1663_v63 = vadd.f32 %v3901_v62, %v3596_v54  ;;  %3904 = vmatprep.subr.msk.mxu0 %vm443_vm1, %v1648_v60  ;;  %3906 = vmatprep.mubr.msk.f32.mxu0 %vm443_vm1, %v1550_v59  ;;  %v1565_v12 = vadd.f32 %v3887_v61, %v3590_v57  ;;  %v2047_v59 = vld [vmem:[#allocation7 + $0x20] sm:$0xff] }
 0x583   : > { %v1559_v4 = vpop.f32.mrf.mxu0  ;;  %v1657_v7 = vpop.f32.mrf.mxu1 }
 0x584   : > { %v1560_v9 = vadd.f32 %v3590_v57, %v1559_v4  ;;  %v1658_v10 = vadd.f32 %v3596_v54, %v1657_v7  ;;  %3909 = vmatprep.subr.msk.mxu1 %vm443_vm1, %v1663_v63  ;;  %v2159_v57 = vld [vmem:[#allocation7 + $0x90] sm:$0xff] }
 0x585   : > { %3905 = vmatpush3.xpose.msk.msra.mxu0 %vm443_vm1, %v1648_v60  ;;  %3910 = vmatpush3.xpose.msk.msra.mxu1 %vm443_vm1, %v1663_v63  ;;  %v2157_v60 = vld [vmem:[#allocation7 + $0x80] sm:$0xff] }
 0x586   : > { %3911 = vmatprep.subr.msk.mxu1 %vm443_vm1, %v1658_v10  ;;  %3913 = vmatprep.mubr.msk.f32.mxu1 %vm443_vm1, %v1560_v9 }
 0x587   : > { %3916 = vmatprep.subr.mxu0 %v4757_v48 }
 0x588   : > { %3907 = vmatmul.mubr.msk.f32.vlgmr.msra.gmra.mxu0 %vm443_vm1, %v1555_v11 }
 0x589   : > { %3912 = vmatpush3.xpose.msk.msra.mxu1 %vm443_vm1, %v1658_v10  ;;  %3917 = vmatpush3.msra.mxu0 %v4757_v48 }
 0x58a   : > { %3918 = vmatprep.subr.mxu0 %v4755_v46  ;;  %3930 = vmatprep.subr.mxu1 %v2050_v38 }
 0x58b   : > { %3919 = vmatpush3.msra.mxu0 %v4755_v46 }
 0x58c   : > { %3914 = vmatmul.mubr.msk.f32.vlgmr.msra.gmra.mxu1 %vm443_vm1, %v1565_v12  ;;  %3923 = vmatprep.subr.mxu0 %v4772_v3  ;;  %v3614_v12 = vld [vmem:[%s5055_s5 + $0x2] ss:$0 sm:$0xff] }
 0x58d   : > { %3931 = vmatpush3.msra.mxu1 %v2050_v38 }
 0x58e   : > { %3932 = vmatprep.subr.mxu1 %v2049_v2 }
 0x58f   : > { %3933 = vmatpush3.msra.mxu1 %v2049_v2  ;;  %v2748_v2 = vld [vmem:[#allocation7 + $0xb8] sm:$0xff] }
 0x590   : > { %3934 = vmatprep.subr.mxu1 %v2048_v58 }
 0x591   : > { %3935 = vmatpush3.msra.mxu1 %v2048_v58 }
 0x592   : > { %3936 = vmatprep.subr.mxu1 %v2047_v59 }
 0x593   : > { %3937 = vmatpush3.msra.mxu1 %v2047_v59 }
 0x648   : > { %v3908_v13 = vpop.f32.mrf.mxu0 }
 0x649   : > { %v1843_v14 = vsel %vm1022_vm9, %v3908_v13, -inf }
 0x64a   : > { %1844 = vmax.xlane.f32.xlu1 %v1843_v14  ;;  %v1744_v15 = vpop.f32.mrf.mxu0 }
 0x64b   : > { %v1840_v16 = vsel %vm1022_vm9, %v1744_v15, -inf }
 0x64c   : > { %1841 = vmax.xlane.f32.xlu0 %v1840_v16  ;;  %v3915_v17 = vpop.f32.mrf.mxu1 }
 0x64d   : > { %v1849_v18 = vsel %vm1022_vm9, %v3915_v17, -inf }
 0x64e   : > { %1850 = vmax.xlane.f32.xlu1 %v1849_v18  ;;  %v1831_v19 = vpop.f32.mrf.mxu1 }
 0x64f   : > { %v1846_v20 = vsel %vm1022_vm9, %v1831_v19, -inf }
 0x650   : > { %1847 = vmax.xlane.f32.xlu0 %v1846_v20 }
 0x6d3   : > { %v1845_v21 = vpop.xlane.xlu1 %1844 }
 0x6d4   : > { %v1853_v22 = vsub.f32 %v3908_v13, %v1845_v21 }
 0x6d5   : > { %v1842_v23 = vpop.xlane.xlu0 %1841 }
 0x6d6   : > { %v1858_v24 = vmul.f32 1.442695, %v1853_v22  ;;  %v1852_v25 = vsub.f32 %v1744_v15, %v1842_v23 }
 0x6d7   : > { %v1851_v47 = vpop.xlane.xlu1 %1850 }
 0x6d8   : > { %4172 = vpow2.f32 %v1858_v24  ;;  %v1856_v26 = vmul.f32 1.442695, %v1852_v25  ;;  %v1855_v27 = vsub.f32 %v3915_v17, %v1851_v47 }
 0x6d9   : > { %v1848_v8 = vpop.xlane.xlu0 %1847 }
 0x6da   : > { %4174 = vpow2.f32 %v1856_v26  ;;  %v1862_v28 = vmul.f32 1.442695, %v1855_v27  ;;  %v1854_v29 = vsub.f32 %v1831_v19, %v1848_v8 }
 0x6dc   : > { %4176 = vpow2.f32 %v1862_v28  ;;  %v1860_v30 = vmul.f32 1.442695, %v1854_v29 }
 0x6de   : > { %4178 = vpow2.f32 %v1860_v30 }
 0x6e5   : > { %v4173_v31 = vpop.eup %4172 }
 0x6e6   : > { %v1867_v32 = vsel %vm1022_vm9, %v4173_v31, 0.0 }
 0x6e7   : > { %v4175_v33 = vpop.eup %4174  ;;  %1868 = vadd.xlane.f32.xlu1 %v1867_v32 }
 0x6e8   : > { %v1864_v6 = vsel %vm1022_vm9, %v4175_v33, 0.0 }
 0x6e9   : > { %v4177_v34 = vpop.eup %4176  ;;  %1865 = vadd.xlane.f32.xlu0 %v1864_v6 }
 0x6ea   : > { %v1873_v35 = vsel %vm1022_vm9, %v4177_v34, 0.0 }
 0x6eb   : > { %v4179_v36 = vpop.eup %4178  ;;  %1874 = vadd.xlane.f32.xlu1 %v1873_v35 }
 0x6ec   : > { %v1870_v37 = vsel %vm1022_vm9, %v4179_v36, 0.0 }
 0x6ed   : > { %1871 = vadd.xlane.f32.xlu0 %v1870_v37 }
 0x770   : > { %v1869_v39 = vpop.xlane.xlu1 %1868 }
 0x771   : > { %4180 = vrcp.f32 %v1869_v39 }
 0x772   : > { %v1866_v40 = vpop.xlane.xlu0 %1865 }
 0x773   : > { %4182 = vrcp.f32 %v1866_v40 }
 0x774   : > { %v1875_v41 = vpop.xlane.xlu1 %1874 }
 0x775   : > { %4184 = vrcp.f32 %v1875_v41 }
 0x776   : > { %v1872_v42 = vpop.xlane.xlu0 %1871 }
 0x777   : > { %4186 = vrcp.f32 %v1872_v42 }
 0x77e   : > { %v4181_v43 = vpop.eup %4180 }
 0x77f   : > { %v1881_v52 = vmul.f32 %v4181_v43, %v4173_v31 }
 0x780   : > { %v4183_v44 = vpop.eup %4182 }
 0x781   : > { %v1880_v45 = vmul.f32 %v4183_v44, %v4175_v33 }
 0x782   : > { %v4185_v0 = vpop.eup %4184 }
 0x783   : > { %3920 = vmatprep.mubr.msk.f32.mxu0 %vm1022_vm9, %v1880_v45  ;;  %v1883_v56 = vmul.f32 %v4185_v0, %v4177_v34 }
 0x784   : > { %v4187_v53 = vpop.eup %4186  ;;  %3921 = vmatmul.mubr.msk.f32.vlgmr.msra.gmra.mxu0 %vm1022_vm9, %v1881_v52 }
 0x785   : > { %3924 = vmatpush3.msra.mxu0 %v4772_v3  ;;  %v1882_v54 = vmul.f32 %v4187_v53, %v4179_v36 }
 0x786   : > { %3925 = vmatprep.subr.mxu0 %v4769_v1 }
 0x787   : > { %3926 = vmatpush3.msra.mxu0 %v4769_v1  ;;  %3927 = vmatprep.mubr.msk.f32.mxu0 %vm1022_vm9, %v1882_v54 }
 0x788   : > { %3928 = vmatmul.mubr.msk.f32.vlgmr.msra.gmra.mxu0 %vm1022_vm9, %v1883_v56  ;;  %3944 = vmatprep.subr.mxu0 %v2160_v55  ;;  %v2638_v56 = vld [vmem:[#allocation7 + $0x58] sm:$0xff] }
 0x789   : > { %3945 = vmatpush3.msra.mxu0 %v2160_v55 }
 0x78a   : > { %3946 = vmatprep.subr.mxu0 %v2159_v57 }
 0x78b   : > { %3947 = vmatpush3.msra.mxu0 %v2159_v57 }
 0x78c   : > { %3948 = vmatprep.subr.mxu0 %v2158_v5 }
 0x78d   : > { %3949 = vmatpush3.msra.mxu0 %v2158_v5 }
 0x78e   : > { %3950 = vmatprep.subr.mxu0 %v2157_v60 }
 0x78f   : > { %3951 = vmatpush3.msra.mxu0 %v2157_v60 }
 0x844   : > { %v3922_v61 = vpop.f32.mrf.mxu0 }
 0x845   : > { %v4824_v4 = vadd.f32 %v3922_v61, %v4757_v48 }
 0x846   : > { %v1956_v62 = vpop.f32.mrf.mxu0 }
 0x847   : > { %v4821_v63 = vadd.f32 %v1956_v62, %v4755_v46 }
 0x848   : > { %v3929_v7 = vpop.f32.mrf.mxu0 }
 0x849   : > { %3938 = vmatprep.mubr.msk.f32.mxu1 %vm443_vm1, %v4821_v63  ;;  %3952 = vmatprep.mubr.msk.f32.mxu0 %vm443_vm1, %v4821_v63  ;;  %v4838_v48 = vadd.f32 %v3929_v7, %v4772_v3 }
 0x84a   : > { %v2037_v9 = vpop.f32.mrf.mxu0  ;;  %3939 = vmatmul.mubr.msk.f32.vlgmr.msra.gmra.mxu1 %vm443_vm1, %v4824_v4  ;;  %3953 = vmatmul.mubr.msk.f32.vlgmr.msra.gmra.mxu0 %vm443_vm1, %v4824_v4 }
 0x84b   : > { %v4835_v46 = vadd.f32 %v2037_v9, %v4769_v1  ;;  %v3620_v1 = vld [vmem:[%s5055_s5 + $0x5] ss:$0 sm:$0xff] }
 0x84d   : > { %3941 = vmatprep.mubr.msk.f32.mxu1 %vm443_vm1, %v4835_v46  ;;  %3955 = vmatprep.mubr.msk.f32.mxu0 %vm443_vm1, %v4835_v46 }
 0x84e   : > { %3942 = vmatmul.mubr.msk.f32.gmra.mxu1 %vm443_vm1, %v4838_v48  ;;  %3956 = vmatmul.mubr.msk.f32.gmra.mxu0 %vm443_vm1, %v4838_v48 }
 0x90a   : > { %v3940_v10 = vpop.f32.mrf.mxu1  ;;  %v3954_v11 = vpop.f32.mrf.mxu0 }
 0x90b   : > { %v2241_v3 = vadd.f32 %v3954_v11, %v3620_v1  ;;  %v2143_v24 = vadd.f32 %v3940_v10, %v3614_v12 }
 0x90c   : > { %v2137_v13 = vpop.f32.mrf.mxu1  ;;  %v2235_v14 = vpop.f32.mrf.mxu0 }
 0x90d   : > { %v2138_v15 = vadd.f32 %v3614_v12, %v2137_v13  ;;  %v2236_v16 = vadd.f32 %v3620_v1, %v2235_v14  ;;  %3958 = vmatprep.subr.msk.mxu1 %vm443_vm1, %v2241_v3  ;;  %v2636_v13 = vld [vmem:[#allocation7 + $0x48] sm:$0xff] }
 0x90e   : > { %v3943_v17 = vpop.f32.mrf.mxu1  ;;  %v3957_v18 = vpop.f32.mrf.mxu0  ;;  %3959 = vmatpush3.xpose.msk.msra.mxu1 %vm443_vm1, %v2241_v3  ;;  %v2637_v3 = vld [vmem:[#allocation7 + $0x50] sm:$0xff]  ;;  %v2746_v14 = vld [vmem:[#allocation7 + $0xa8] sm:$0xff] }
 0x90f   : > { %v2251_v19 = vadd.f32 %v3957_v18, %v3620_v1  ;;  %3960 = vmatprep.subr.msk.mxu1 %vm443_vm1, %v2236_v16  ;;  %3962 = vmatprep.mubr.msk.f32.mxu1 %vm443_vm1, %v2138_v15  ;;  %v2153_v25 = vadd.f32 %v3943_v17, %v3614_v12  ;;  %v2635_v15 = vld [vmem:[#allocation7 + $0x40] sm:$0xff] }
 0x910   : > { %v2147_v20 = vpop.f32.mrf.mxu1  ;;  %v2245_v21 = vpop.f32.mrf.mxu0 }
 0x911   : > { %v2148_v22 = vadd.f32 %v3614_v12, %v2147_v20  ;;  %v2246_v23 = vadd.f32 %v3620_v1, %v2245_v21  ;;  %3965 = vmatprep.subr.msk.mxu0 %vm443_vm1, %v2251_v19  ;;  %v2747_v12 = vld [vmem:[#allocation7 + $0xb0] sm:$0xff] }
 0x912   : > { %3961 = vmatpush3.xpose.msk.msra.mxu1 %vm443_vm1, %v2236_v16  ;;  %3966 = vmatpush3.xpose.msk.msra.mxu0 %vm443_vm1, %v2251_v19  ;;  %v2745_v16 = vld [vmem:[#allocation7 + $0xa0] sm:$0xff] }
 0x913   : > { %3967 = vmatprep.subr.msk.mxu0 %vm443_vm1, %v2246_v23  ;;  %3969 = vmatprep.mubr.msk.f32.mxu0 %vm443_vm1, %v2148_v22 }
 0x914   : > { %3972 = vmatprep.subr.mxu1 %v4824_v4 }
 0x915   : > { %3963 = vmatmul.mubr.msk.f32.vlgmr.msra.gmra.mxu1 %vm443_vm1, %v2143_v24 }
 0x916   : > { %3968 = vmatpush3.xpose.msk.msra.mxu0 %vm443_vm1, %v2246_v23  ;;  %3973 = vmatpush3.msra.mxu1 %v4824_v4 }
 0x917   : > { %3974 = vmatprep.subr.mxu1 %v4821_v63  ;;  %3979 = vmatprep.subr.mxu0 %v4838_v48 }
 0x918   : > { %3975 = vmatpush3.msra.mxu1 %v4821_v63 }
 0x919   : > { %3970 = vmatmul.mubr.msk.f32.vlgmr.msra.gmra.mxu0 %vm443_vm1, %v2153_v25  ;;  %3986 = vmatprep.subr.mxu1 %v2638_v56  ;;  %v3638_v25 = vld [vmem:[%s5055_s5 + $0x3] ss:$0 sm:$0xff] }
 0x91a   : > { %3980 = vmatpush3.msra.mxu0 %v4838_v48 }
 0x91b   : > { %3981 = vmatprep.subr.mxu0 %v4835_v46 }
 0x91c   : > { %3982 = vmatpush3.msra.mxu0 %v4835_v46 }
 0x91d   : > { %4000 = vmatprep.subr.mxu0 %v2748_v2 }
 0x9d5   : > { %v3964_v47 = vpop.f32.mrf.mxu1 }
 0x9d6   : > { %v2431_v26 = vsel %vm1022_vm9, %v3964_v47, -inf }
 0x9d7   : > { %2432 = vmax.xlane.f32.xlu1 %v2431_v26  ;;  %v2332_v27 = vpop.f32.mrf.mxu1 }
 0x9d8   : > { %v2428_v8 = vsel %vm1022_vm9, %v2332_v27, -inf }
 0x9d9   : > { %2429 = vmax.xlane.f32.xlu0 %v2428_v8  ;;  %v3971_v28 = vpop.f32.mrf.mxu0 }
 0x9da   : > { %v2437_v29 = vsel %vm1022_vm9, %v3971_v28, -inf }
 0x9db   : > { %2438 = vmax.xlane.f32.xlu1 %v2437_v29  ;;  %v2419_v30 = vpop.f32.mrf.mxu0 }
 0x9dc   : > { %v2434_v31 = vsel %vm1022_vm9, %v2419_v30, -inf }
 0x9dd   : > { %2435 = vmax.xlane.f32.xlu0 %v2434_v31 }
 0xa60   : > { %v2433_v32 = vpop.xlane.xlu1 %2432 }
 0xa61   : > { %v2441_v33 = vsub.f32 %v3964_v47, %v2433_v32 }
 0xa62   : > { %v2430_v6 = vpop.xlane.xlu0 %2429 }
 0xa63   : > { %v2446_v34 = vmul.f32 1.442695, %v2441_v33  ;;  %v2440_v35 = vsub.f32 %v2332_v27, %v2430_v6 }
 0xa64   : > { %v2439_v36 = vpop.xlane.xlu1 %2438 }
 0xa65   : > { %4188 = vpow2.f32 %v2446_v34  ;;  %v2444_v37 = vmul.f32 1.442695, %v2440_v35  ;;  %v2443_v38 = vsub.f32 %v3971_v28, %v2439_v36 }
 0xa66   : > { %v2436_v39 = vpop.xlane.xlu0 %2435 }
 0xa67   : > { %4190 = vpow2.f32 %v2444_v37  ;;  %v2450_v40 = vmul.f32 1.442695, %v2443_v38  ;;  %v2442_v41 = vsub.f32 %v2419_v30, %v2436_v39 }
 0xa69   : > { %4192 = vpow2.f32 %v2450_v40  ;;  %v2448_v42 = vmul.f32 1.442695, %v2442_v41 }
 0xa6b   : > { %4194 = vpow2.f32 %v2448_v42 }
 0xa72   : > { %v4189_v43 = vpop.eup %4188 }
 0xa73   : > { %v2455_v44 = vsel %vm1022_vm9, %v4189_v43, 0.0 }
 0xa74   : > { %v4191_v45 = vpop.eup %4190  ;;  %2456 = vadd.xlane.f32.xlu1 %v2455_v44 }
 0xa75   : > { %v2452_v52 = vsel %vm1022_vm9, %v4191_v45, 0.0 }
 0xa76   : > { %v4193_v0 = vpop.eup %4192  ;;  %2453 = vadd.xlane.f32.xlu0 %v2452_v52 }
 0xa77   : > { %v2461_v53 = vsel %vm1022_vm9, %v4193_v0, 0.0 }
 0xa78   : > { %v4195_v54 = vpop.eup %4194  ;;  %2462 = vadd.xlane.f32.xlu1 %v2461_v53 }
 0xa79   : > { %v2458_v55 = vsel %vm1022_vm9, %v4195_v54, 0.0 }
 0xa7a   : > { %2459 = vadd.xlane.f32.xlu0 %v2458_v55 }
 0xafd   : > { %v2457_v57 = vpop.xlane.xlu1 %2456 }
 0xafe   : > { %4196 = vrcp.f32 %v2457_v57 }
 0xaff   : > { %v2454_v58 = vpop.xlane.xlu0 %2453 }
 0xb00   : > { %4198 = vrcp.f32 %v2454_v58 }
 0xb01   : > { %v2463_v5 = vpop.xlane.xlu1 %2462 }
 0xb02   : > { %4200 = vrcp.f32 %v2463_v5 }
 0xb03   : > { %v2460_v59 = vpop.xlane.xlu0 %2459 }
 0xb04   : > { %4202 = vrcp.f32 %v2460_v59 }
 0xb0b   : > { %v4197_v60 = vpop.eup %4196 }
 0xb0c   : > { %v2469_v7 = vmul.f32 %v4197_v60, %v4189_v43 }
 0xb0d   : > { %v4199_v61 = vpop.eup %4198 }
 0xb0e   : > { %v2468_v62 = vmul.f32 %v4199_v61, %v4191_v45 }
 0xb0f   : > { %v4201_v9 = vpop.eup %4200 }
 0xb10   : > { %3976 = vmatprep.mubr.msk.f32.mxu1 %vm1022_vm9, %v2468_v62  ;;  %v2471_v11 = vmul.f32 %v4201_v9, %v4193_v0 }
 0xb11   : > { %v4203_v1 = vpop.eup %4202  ;;  %3977 = vmatmul.mubr.msk.f32.vlgmr.msra.gmra.mxu1 %vm1022_vm9, %v2469_v7 }
 0xb12   : > { %v2470_v10 = vmul.f32 %v4203_v1, %v4195_v54  ;;  %3987 = vmatpush3.msra.mxu1 %v2638_v56 }
 0xb13   : > { %3988 = vmatprep.subr.mxu1 %v2637_v3 }
 0xb14   : > { %3983 = vmatprep.mubr.msk.f32.mxu0 %vm1022_vm9, %v2470_v10  ;;  %3989 = vmatpush3.msra.mxu1 %v2637_v3 }
 0xb15   : > { %3984 = vmatmul.mubr.msk.f32.vlgmr.msra.gmra.mxu0 %vm1022_vm9, %v2471_v11  ;;  %3990 = vmatprep.subr.mxu1 %v2636_v13  ;;  %v4230_v11 = vld [vmem:[%s4672_s11] sm:$0x1]  ;;  %s5068_s11 = scalar_lea.vmem [#allocation9], %s4592_s4 }
 0xb16   : > { %4001 = vmatpush3.msra.mxu0 %v2748_v2  ;;  %3991 = vmatpush3.msra.mxu1 %v2636_v13  ;;  %v1235_v3 = vsel %vm1234_vm11, %v4230_v11, 0.0 }
 0xb17   : > { %4002 = vmatprep.subr.mxu0 %v2747_v12  ;;  %3992 = vmatprep.subr.mxu1 %v2635_v15 }
 0xb18   : > { %4003 = vmatpush3.msra.mxu0 %v2747_v12  ;;  %3993 = vmatpush3.msra.mxu1 %v2635_v15  ;;  %v3226_v12 = vld [vmem:[%s5056_s6 + $0x18] sm:$0xff] }
 0xb19   : > { %4004 = vmatprep.subr.mxu0 %v2746_v14 }
 0xb1a   : > { %4005 = vmatpush3.msra.mxu0 %v2746_v14 }
 0xb1b   : > { %4006 = vmatprep.subr.mxu0 %v2745_v16 }
 0xb1c   : > { %4007 = vmatpush3.msra.mxu0 %v2745_v16 }
 0xbd1   : > { %v3978_v17 = vpop.f32.mrf.mxu1 }
 0xbd2   : > { %v4890_v20 = vadd.f32 %v3978_v17, %v4824_v4 }
 0xbd3   : > { %v2544_v18 = vpop.f32.mrf.mxu1 }
 0xbd4   : > { %v4887_v19 = vadd.f32 %v2544_v18, %v4821_v63 }
 0xbd5   : > { %v3985_v21 = vpop.f32.mrf.mxu0 }
 0xbd6   : > { %3994 = vmatprep.mubr.msk.f32.mxu1 %vm443_vm1, %v4887_v19  ;;  %4008 = vmatprep.mubr.msk.f32.mxu0 %vm443_vm1, %v4887_v19  ;;  %v4904_v4 = vadd.f32 %v3985_v21, %v4838_v48 }
 0xbd7   : > { %v2625_v22 = vpop.f32.mrf.mxu0  ;;  %3995 = vmatmul.mubr.msk.f32.vlgmr.msra.gmra.mxu1 %vm443_vm1, %v4890_v20  ;;  %4009 = vmatmul.mubr.msk.f32.vlgmr.msra.gmra.mxu0 %vm443_vm1, %v4890_v20 }
 0xbd8   : > { %v4901_v63 = vadd.f32 %v2625_v22, %v4835_v46  ;;  %v3644_v46 = vld [vmem:[%s5055_s5 + $0x6] ss:$0 sm:$0xff] }
 0xbda   : > { %3997 = vmatprep.mubr.msk.f32.mxu1 %vm443_vm1, %v4901_v63  ;;  %4011 = vmatprep.mubr.msk.f32.mxu0 %vm443_vm1, %v4901_v63 }
 0xbdb   : > { %3998 = vmatmul.mubr.msk.f32.gmra.mxu1 %vm443_vm1, %v4904_v4  ;;  %4012 = vmatmul.mubr.msk.f32.gmra.mxu0 %vm443_vm1, %v4904_v4 }
 0xc97   : > { %v3996_v23 = vpop.f32.mrf.mxu1  ;;  %v4010_v24 = vpop.f32.mrf.mxu0 }
 0xc98   : > { %v2829_v48 = vadd.f32 %v4010_v24, %v3644_v46  ;;  %v2731_v34 = vadd.f32 %v3996_v23, %v3638_v25 }
 0xc99   : > { %v2725_v47 = vpop.f32.mrf.mxu1  ;;  %v2823_v26 = vpop.f32.mrf.mxu0 }
 0xc9a   : > { %v2726_v27 = vadd.f32 %v3638_v25, %v2725_v47  ;;  %v2824_v8 = vadd.f32 %v3644_v46, %v2823_v26  ;;  %4014 = vmatprep.subr.msk.mxu1 %vm443_vm1, %v2829_v48  ;;  %v1311_v47 = vmul.f32 0.5, %v4759_v50  ;;  %v3224_v50 = vld [vmem:[%s5056_s6 + $0x8] sm:$0xff] }
 0xc9b   : > { %v3999_v28 = vpop.f32.mrf.mxu1  ;;  %v4013_v29 = vpop.f32.mrf.mxu0  ;;  %4015 = vmatpush3.xpose.msk.msra.mxu1 %vm443_vm1, %v2829_v48 }
 0xc9c   : > { %v2839_v30 = vadd.f32 %v4013_v29, %v3644_v46  ;;  %4016 = vmatprep.subr.msk.mxu1 %vm443_vm1, %v2824_v8  ;;  %4018 = vmatprep.mubr.msk.f32.mxu1 %vm443_vm1, %v2726_v27  ;;  %v2741_v35 = vadd.f32 %v3999_v28, %v3638_v25  ;;  %v3223_v28 = vld [vmem:[%s5056_s6] sm:$0xff] }
 0xc9d   : > { %v2735_v31 = vpop.f32.mrf.mxu1  ;;  %v2833_v32 = vpop.f32.mrf.mxu0 }
 0xc9e   : > { %v2736_v33 = vadd.f32 %v3638_v25, %v2735_v31  ;;  %v2834_v6 = vadd.f32 %v3644_v46, %v2833_v32  ;;  %4021 = vmatprep.subr.msk.mxu0 %vm443_vm1, %v2839_v30 }
 0xc9f   : > { %4017 = vmatpush3.xpose.msk.msra.mxu1 %vm443_vm1, %v2824_v8  ;;  %4022 = vmatpush3.xpose.msk.msra.mxu0 %vm443_vm1, %v2839_v30  ;;  %v3225_v8 = vld [vmem:[%s5056_s6 + $0x10] sm:$0xff] }
 0xca0   : > { %4023 = vmatprep.subr.msk.mxu0 %vm443_vm1, %v2834_v6  ;;  %4025 = vmatprep.mubr.msk.f32.mxu0 %vm443_vm1, %v2736_v33 }
 0xca1   : > { %4028 = vmatprep.subr.mxu1 %v4890_v20 }
 0xca2   : > { %4019 = vmatmul.mubr.msk.f32.vlgmr.msra.gmra.mxu1 %vm443_vm1, %v2731_v34 }
 0xca3   : > { %4024 = vmatpush3.xpose.msk.msra.mxu0 %vm443_vm1, %v2834_v6  ;;  %4029 = vmatpush3.msra.mxu1 %v4890_v20 }
 0xca4   : > { %4030 = vmatprep.subr.mxu1 %v4887_v19  ;;  %4035 = vmatprep.subr.mxu0 %v4904_v4 }
 0xca5   : > { %4031 = vmatpush3.msra.mxu1 %v4887_v19 }
 0xca6   : > { %4026 = vmatmul.mubr.msk.f32.vlgmr.msra.gmra.mxu0 %vm443_vm1, %v2741_v35  ;;  %4042 = vmatprep.subr.mxu1 %v3226_v12 }
 0xca7   : > { %4036 = vmatpush3.msra.mxu0 %v4904_v4 }
 0xca8   : > { %4037 = vmatprep.subr.mxu0 %v4901_v63 }
 0xca9   : > { %4038 = vmatpush3.msra.mxu0 %v4901_v63 }
 0xd62   : > { %v4020_v36 = vpop.f32.mrf.mxu1 }
 0xd63   : > { %v3019_v37 = vsel %vm1022_vm9, %v4020_v36, -inf }
 0xd64   : > { %3020 = vmax.xlane.f32.xlu1 %v3019_v37  ;;  %v2920_v38 = vpop.f32.mrf.mxu1 }
 0xd65   : > { %v3016_v39 = vsel %vm1022_vm9, %v2920_v38, -inf }
 0xd66   : > { %3017 = vmax.xlane.f32.xlu0 %v3016_v39  ;;  %v4027_v40 = vpop.f32.mrf.mxu0 }
 0xd67   : > { %v3025_v41 = vsel %vm1022_vm9, %v4027_v40, -inf }
 0xd68   : > { %3026 = vmax.xlane.f32.xlu1 %v3025_v41  ;;  %v3007_v42 = vpop.f32.mrf.mxu0 }
 0xd69   : > { %v3022_v43 = vsel %vm1022_vm9, %v3007_v42, -inf }
 0xd6a   : > { %3023 = vmax.xlane.f32.xlu0 %v3022_v43 }
 0xded   : > { %v3021_v44 = vpop.xlane.xlu1 %3020 }
 0xdee   : > { %v3029_v45 = vsub.f32 %v4020_v36, %v3021_v44 }
 0xdef   : > { %v3018_v52 = vpop.xlane.xlu0 %3017 }
 0xdf0   : > { %v3034_v0 = vmul.f32 1.442695, %v3029_v45  ;;  %v3028_v53 = vsub.f32 %v2920_v38, %v3018_v52 }
 0xdf1   : > { %v3027_v54 = vpop.xlane.xlu1 %3026 }
 0xdf2   : > { %4204 = vpow2.f32 %v3034_v0  ;;  %v3032_v55 = vmul.f32 1.442695, %v3028_v53  ;;  %v3031_v56 = vsub.f32 %v4027_v40, %v3027_v54 }
 0xdf3   : > { %v3024_v2 = vpop.xlane.xlu0 %3023 }
 0xdf4   : > { %4206 = vpow2.f32 %v3032_v55  ;;  %v3038_v57 = vmul.f32 1.442695, %v3031_v56  ;;  %v3030_v58 = vsub.f32 %v3007_v42, %v3024_v2 }
 0xdf6   : > { %4208 = vpow2.f32 %v3038_v57  ;;  %v3036_v5 = vmul.f32 1.442695, %v3030_v58 }
 0xdf8   : > { %4210 = vpow2.f32 %v3036_v5 }
 0xdff   : > { %v4205_v59 = vpop.eup %4204 }
 0xe00   : > { %v3043_v60 = vsel %vm1022_vm9, %v4205_v59, 0.0 }
 0xe01   : > { %v4207_v61 = vpop.eup %4206  ;;  %3044 = vadd.xlane.f32.xlu1 %v3043_v60 }
 0xe02   : > { %v3040_v62 = vsel %vm1022_vm9, %v4207_v61, 0.0 }
 0xe03   : > { %v4209_v7 = vpop.eup %4208  ;;  %3041 = vadd.xlane.f32.xlu0 %v3040_v62 }
 0xe04   : > { %v3049_v9 = vsel %vm1022_vm9, %v4209_v7, 0.0 }
 0xe05   : > { %v4211_v1 = vpop.eup %4210  ;;  %3050 = vadd.xlane.f32.xlu1 %v3049_v9 }
 0xe06   : > { %v3046_v10 = vsel %vm1022_vm9, %v4211_v1, 0.0 }
 0xe07   : > { %3047 = vadd.xlane.f32.xlu0 %v3046_v10 }
 0xe0b   : > { %1236 = vadd.xlane.f32.xlu0 %v1235_v3 }
 0xe8a   : > { %v3045_v13 = vpop.xlane.xlu1 %3044 }
 0xe8b   : > { %4212 = vrcp.f32 %v3045_v13 }
 0xe8c   : > { %v3042_v14 = vpop.xlane.xlu0 %3041 }
 0xe8d   : > { %4214 = vrcp.f32 %v3042_v14 }
 0xe8e   : > { %v3051_v15 = vpop.xlane.xlu1 %3050 }
 0xe8f   : > { %4216 = vrcp.f32 %v3051_v15 }
 0xe90   : > { %v3048_v16 = vpop.xlane.xlu0 %3047 }
 0xe91   : > { %4218 = vrcp.f32 %v3048_v16 }
 0xe94   : > { %v1237_v17 = vpop.xlane.xlu0 %1236 }
 0xe95   : > { %4220 = vrcp.f32 %v1237_v17 }
 0xe98   : > { %v4213_v18 = vpop.eup %4212 }
 0xe99   : > { %v3057_v46 = vmul.f32 %v4213_v18, %v4205_v59 }
 0xe9a   : > { %v4215_v21 = vpop.eup %4214 }
 0xe9b   : > { %v3056_v22 = vmul.f32 %v4215_v21, %v4207_v61 }
 0xe9c   : > { %v4217_v23 = vpop.eup %4216 }
 0xe9d   : > { %4032 = vmatprep.mubr.msk.f32.mxu1 %vm1022_vm9, %v3056_v22  ;;  %v3059_v25 = vmul.f32 %v4217_v23, %v4209_v7  ;;  %v3352_v7 = vsub.s32 1, %v4678_v49 }
 0xe9e   : > { %v4219_v24 = vpop.eup %4218  ;;  %4033 = vmatmul.mubr.msk.f32.vlgmr.msra.gmra.mxu1 %vm1022_vm9, %v3057_v46 }
 0xe9f   : > { %v3058_v48 = vmul.f32 %v4219_v24, %v4211_v1  ;;  %4043 = vmatpush3.msra.mxu1 %v3226_v12 }
 0xea0   : > { %4044 = vmatprep.subr.mxu1 %v3225_v8 }
 0xea1   : > { %4039 = vmatprep.mubr.msk.f32.mxu0 %vm1022_vm9, %v3058_v48  ;;  %4045 = vmatpush3.msra.mxu1 %v3225_v8 }
 0xea2   : > { %v4221_v26 = vpop.eup %4220  ;;  %4040 = vmatmul.mubr.msk.f32.vlgmr.msra.gmra.mxu0 %vm1022_vm9, %v3059_v25  ;;  %4046 = vmatprep.subr.mxu1 %v3224_v50 }
 0xea3   : > { %v1313_v27 = vmul.f32 %v4221_v26, %v1311_v47  ;;  %4047 = vmatpush3.msra.mxu1 %v3224_v50 }
 0xea4   : > { %4048 = vmatprep.subr.mxu1 %v3223_v28 }
 0xea5   : > { %1314 = vst.msk [vmem:[%s5068_s11] sm:$0x1] %vm1229_vm10, %v1313_v27  ;;  %4049 = vmatpush3.msra.mxu1 %v3223_v28 }
 0xf5e   : > { %v4034_v29 = vpop.f32.mrf.mxu1 }
 0xf5f   : > { %v3138_v32 = vadd.f32 %v4034_v29, %v4890_v20 }
 0xf60   : > { %v3132_v30 = vpop.f32.mrf.mxu1 }
 0xf61   : > { %v3133_v31 = vadd.f32 %v3132_v30, %v4887_v19  ;;  %v3222_v19 = vld [vmem:[%s5057_s7] sm:$0x3] }
 0xf62   : > { %v4041_v33 = vpop.f32.mrf.mxu0  ;;  %v3230_v20 = vrot.slane %v3222_v19, %v807_v51  ;;  %v3353_v11 = vrot.slane %v3222_v19, %v3352_v7 }
 0xf63   : > { %4050 = vmatprep.mubr.msk.f32.mxu1 %vm443_vm1, %v3133_v31  ;;  %v3219_v35 = vadd.f32 %v4041_v33, %v4904_v4 }
 0xf64   : > { %v3213_v6 = vpop.f32.mrf.mxu0  ;;  %4051 = vmatmul.mubr.msk.f32.vlgmr.msra.gmra.mxu1 %vm443_vm1, %v3138_v32 }
 0xf65   : > { %v3214_v34 = vadd.f32 %v3213_v6, %v4901_v63 }
 0xf67   : > { %4053 = vmatprep.mubr.msk.f32.mxu1 %vm443_vm1, %v3214_v34 }
 0xf68   : > { %4054 = vmatmul.mubr.msk.f32.gmra.mxu1 %vm443_vm1, %v3219_v35 }
0x1024   : > { %v4052_v36 = vpop.f32.mrf.mxu1 }
0x1025   : > { %v3315_v37 = vadd.f32 %v4052_v36, %v3230_v20 }
0x1026   : > { %v3309_v38 = vpop.f32.mrf.mxu1 }
0x1027   : > { %4222 = vtanh.f32 %v3315_v37  ;;  %v3310_v39 = vadd.f32 %v3309_v38, %v3230_v20 }
0x1028   : > { %v4055_v40 = vpop.f32.mrf.mxu1 }
0x1029   : > { %4224 = vtanh.f32 %v3310_v39  ;;  %v3325_v63 = vadd.f32 %v4055_v40, %v3230_v20 }
0x102a   : > { %v3319_v4 = vpop.f32.mrf.mxu1 }
0x102b   : > { %4226 = vtanh.f32 %v3325_v63  ;;  %v3320_v41 = vadd.f32 %v3319_v4, %v3230_v20 }
0x102d   : > { %4228 = vtanh.f32 %v3320_v41 }
0x1034   : > { %v4223_v42 = vpop.eup %4222 }
0x1035   : > { %v3333_v45 = vsel %vm1022_vm9, %v4223_v42, 0.0 }
0x1036   : > { %v4225_v43 = vpop.eup %4224 }
0x1037   : > { %v3332_v44 = vsel %vm1022_vm9, %v4225_v43, 0.0 }
0x1038   : > { %v4227_v52 = vpop.eup %4226  ;;  %v3334_v51 = vadd.f32 %v3333_v45, %v3332_v44 }
0x1039   : > { %v3342_v54 = vsel %vm1022_vm9, %v4227_v52, 0.0 }
0x103a   : > { %v4229_v0 = vpop.eup %4228  ;;  %v3335_v53 = vrot.slane %v3334_v51, 4 }
0x103b   : > { %v3341_v55 = vsel %vm1022_vm9, %v4229_v0, 0.0 }
0x103c   : > { %v3336_v56 = vadd.f32 %v3335_v53, %v3334_v51  ;;  %v3343_v2 = vadd.f32 %v3342_v54, %v3341_v55 }
0x103e   : > { %v3337_v57 = vrot.slane %v3336_v56, 2  ;;  %v3344_v58 = vrot.slane %v3343_v2, 4 }
0x1040   : > { %v3338_v5 = vadd.f32 %v3337_v57, %v3336_v56  ;;  %v3345_v59 = vadd.f32 %v3344_v58, %v3343_v2 }
0x1042   : > { %v3346_v60 = vrot.slane %v3345_v59, 2  ;;  %v3339_v61 = vrot.slane %v3338_v5, 1 }
0x1044   : > { %v3347_v62 = vadd.f32 %v3346_v60, %v3345_v59  ;;  %v3340_v1 = vadd.f32 %v3339_v61, %v3338_v5 }
0x1046   : > { %v3348_v9 = vrot.slane %v3347_v62, 1  ;;  %v3354_v12 = vmul.f32 %v3353_v11, %v3340_v1 }
0x1048   : > { %v3349_v10 = vadd.f32 %v3348_v9, %v3347_v62 }
0x104a   : > { %v3355_v3 = vmul.f32 %v3353_v11, %v3349_v10 }
0x104c   : > { %v3358_v13 = vrot.slane %v3355_v3, 7 }
0x104e   : > { %v3360_v14 = vsel %vm3359_vm12, %v3358_v13, %v3354_v12 }
0x104f   : > { %v3363_v15 = vsel %vm3362_vm13, %v3360_v14, 0.0 }
0x1050   : > { %3364 = vadd.xlane.f32.xlu1 %v3363_v15 }
0x1051   : > { %4324 = shalt.err (!%p4321_p12)
}
0x1052   : > { %s4325_s30 = scalar_lea.hbm %s3391_s21, 16  ;;  %s4329_s3 = scalar_lea.hbm %s5059_s9, 48 }
0x1053   : > { %p4326_p3 = scmp.ne.s32.totalorder %s3391_s21, %s4325_s30  ;;  %p4330_p4 = scmp.lt.s32.totalorder %s3391_s21, %s5059_s9 }
0x1054   : > { %p4331_p8 = scmp.lt.s32.totalorder %s4329_s3, %s4325_s30 }
0x1055   : > { %p4327_p0 = pnand %p4326_p3, %p5087_p1 }
0x1056   : > { %p4332_p5 = por %p4331_p8, %p4330_p4 }
0x1057   : > { %p4328_p13 = pneg %p4327_p0 }
0x1059   : > { %p4333_p10 = pnand %p4332_p5, %p4328_p13 }
0x105b   : > { %4336 = shalt.err (!%p4333_p10)
}
0x105c   : > { %4066 = dma.vmem_to_hbm [thread:$0]  (%p5087_p1), %s3394_s15, 16, %s3391_s21, %s3374_s23  }
0x105d   : > { %s3404_s25 = scalar_lea.hbm %s5060_s10, %s3665_s26  ;;  %s5088_s28 = scalar_lea.vmem [#allocation9], %s4592_s4 }
0x105e   : > { %s3406_s12 = sshll.u32 %s5088_s28, 4  ;;  %s3378_s11 = scalar_lea.sflag [#allocation10], %s4592_s4  ;;  %s3407_s12 = int_to_ptr.vmem [resolvable:$true] %s3406_s12 }
0x105f   : > { %s4337_s30 = scalar_lea.vmem %s3407_s12, 16  ;;  %s4419_s22 = smov [#allocation9]  }
0x1060   : > { %p4338_p2 = scmp.ne.s32.totalorder %s3407_s12, %s4337_s30  ;;  %s4341_s3 = sshll.u32 %s4419_s22, 4  ;;  %s4342_s3 = int_to_ptr.vmem [resolvable:$false] %s4341_s3 }
0x1061   : > { %s4343_s19 = scalar_lea.vmem %s4342_s3, 32  ;;  %p4344_p7 = scmp.lt.s32.totalorder %s3407_s12, %s4342_s3 }
0x1062   : > { %p4339_p6 = pnand %p4338_p2, %p5087_p1  ;;  %p4345_p9 = scmp.lt.s32.totalorder %s4343_s19, %s4337_s30 }
0x1064   : > { %p4340_p11 = pneg %p4339_p6  ;;  %p4346_p12 = por %p4345_p9, %p4344_p7 }
0x1066   : > { %p4347_p3 = pnand %p4346_p12, %p4340_p11 }
0x1068   : > { %4350 = shalt.err (!%p4347_p3)
}
0x1069   : > { %s4351_s17 = scalar_lea.hbm %s3404_s25, 16  ;;  %s4355_s15 = scalar_lea.hbm %s5060_s10, 48 }
0x106a   : > { %p4352_p0 = scmp.ne.s32.totalorder %s3404_s25, %s4351_s17  ;;  %p4356_p8 = scmp.lt.s32.totalorder %s3404_s25, %s5060_s10 }
0x106b   : > { %p4357_p5 = scmp.lt.s32.totalorder %s4355_s15, %s4351_s17 }
0x106c   : > { %p4353_p13 = pnand %p4352_p0, %p5087_p1 }
0x106d   : > { %p4358_p10 = por %p4357_p5, %p4356_p8 }
0x106e   : > { %p4354_p4 = pneg %p4353_p13 }
0x1070   : > { %p4359_p2 = pnand %p4358_p10, %p4354_p4 }
0x1072   : > { %4362 = shalt.err (!%p4359_p2)
}
0x1073   : > { %4067 = dma.vmem_to_hbm [thread:$0]  (%p5087_p1), %s3407_s12, 16, %s3404_s25, %s3378_s11   ;;  %vm3367_vm14 = vcmask 1024  }
0x1074   : > { %s3563_s18 = sshll.u32 %s4666_s29, 1 }
0x1075   : > { %s436_s30 = scalar_lea.vmem %s5058_s8, %s3563_s18 }
0x10d9   : > { %v3365_v49 = vpop.xlane.xlu1 %3364 }
0x10da   : > { %v3366_v16 = vmul.f32 0.0625, %v3365_v49 }
0x10dc   : > { %3368 = vst.msk [vmem:[%s436_s30] sm:$0x3] %vm3367_vm14, %v3366_v16 }
0x10dd PF: > { %p4093_p6 = scmp.ge.s32.totalorder %s4409_s16, 2  ;;  %s3425_s22 = sand.u32 1, %s4397_s13  }
0x10de   : > { %p5089_p11 = scmp.ne.s32.totalorder %s5073_s20, 0  ;;  %s3426_s27 = scalar_lea.sflag [#allocation4], %s3425_s22 }
0x10e0   : > { %p4082_p7 = pnand %p4093_p6, %p5089_p11 }
0x10e2   : > { %p4083_p9 = pneg %p4082_p7 }
0x10e4   : > { %4388 = dma.done.wait (%p4083_p9), %s3426_s27, 16  }
0x10e5   : > { %4390 = vsyncadd (%p4083_p9), %s3426_s27, 4294967280  ;;  %s3434_s29 = scalar_lea.sflag [#allocation10], %s3425_s22 }
0x10e6   : > { %4392 = dma.done.wait (%p4083_p9), %s3434_s29, 16  }
0x10e7   : > { %4394 = vsyncadd (%p4083_p9), %s3434_s29, 4294967280  ;;  %s5090_s16 = sld [smem:[#allocation16_spill]]  ;;  %s5093_s13 = smov %s4401_s14 }
0x10e8   : > { %s5091_s25 = sld [smem:[#allocation15_spill]] }
0x10e9   : > { %s5092_s15 = sld [smem:[#allocation17_spill]] }
0x10ed   : > { %p28_p1 = scmp.ge.s32.totalorder %s5090_s16, 5  }
0x10ee   : > { %s5094_s14 = smov %s5091_s25 }
0x10ef   :  { %30 = sbr.rel (!%p28_p1) target bundleno = 11 (0xb), region = 148 }
0x10f4   :  { %3438 = vsyncpa [#allocation3], 1 }
0x10f5   :  { %3440 = vsyncpa [#allocation3 + $0x1], 1 }
0x10f6   :  { %3441 = vsyncpa [#allocation6], 1 }
0x10f7   :  { %3442 = vsyncpa [#allocation4], 1 }
0x10f8   :  { %3444 = vsyncpa [#allocation4 + $0x1], 1 }
0x10f9   :  { %3445 = vsyncpa [#allocation10], 1 }
0x10fa   :  { %3447 = vsyncpa [#allocation10 + $0x1], 1 }

</bundles_post_ra>
